<compile_context>
chip_gen: v6e
topology: v6e:2x2x1
jax: 0.10.0
libtpu: 0.0.40
codegen_flags: <defaults>
</compile_context>

<pallas_src>
import functools

import jax
import jax.numpy as jnp
from jax import lax
from jax.experimental import pallas as pl
from jax.experimental.pallas import tpu as pltpu


def _round_up(v, m):
    return ((v + m - 1) // m) * m


# -----------------------------------------------------------------------------
# Kernel
# -----------------------------------------------------------------------------
def _adv_aug_kernel(x_ref, d_ref, wt_ref, out_ref, *,
                    n_power, xi, epsilon, mse_scale, approx_recip):
    """x_ref/out_ref: (tm, D) f32; d_ref: (tm, D) bf16; wt_ref: (D, F_pad) bf16."""
    wt = wt_ref[...]                           # VMEM-resident across the grid

    def recip(v):
        if approx_recip:
            return pl.reciprocal(v, approx=True)   # EUP slot, effectively free
        return 1.0 / v

    def power_step(_, d):
        # d_n = XI * d / (||d||_2 + 1e-8), per-sample norm over non-batch dims.
        nrm = jnp.sqrt(jnp.sum(d * d, axis=1, keepdims=True))
        d_n = (xi * d) * recip(nrm + 1e-8)
        # feature_ad - feature = d_n @ Wt (linear encoder); bf16 MXU, f32 acc.
        f = jnp.dot(d_n.astype(jnp.bfloat16), wt,
                    preferred_element_type=jnp.float32)
        # grad_d MSE = 2/(B*F) * (d_n @ Wt) @ Wt^T.  Contract Wt directly on its
        # F axis (A @ B^T form) -- no separate Wt^T operand in HBM/VMEM.
        g = lax.dot_general(f.astype(jnp.bfloat16), wt,
                            dimension_numbers=(((1,), (1,)), ((), ())),
                            preferred_element_type=jnp.float32)
        return mse_scale * g

    d = d_ref[...].astype(jnp.float32)
    if n_power <= 4:
        # Short fixed trip count: static unroll keeps LLO scheduling visibility.
        for _ in range(n_power):
            d = power_step(0, d)
    else:
        # Larger n_power: carried loop bounds vreg live ranges / code size.
        d = lax.fori_loop(0, n_power, power_step, d, unroll=False)

    # r_adv = epsilon * d / (||d||_2 + 1e-8);  x_adv = x + r_adv
    nrm = jnp.sqrt(jnp.sum(d * d, axis=1, keepdims=True))
    out_ref[...] = x_ref[...] + (epsilon * d) * recip(nrm + 1e-8)


# -----------------------------------------------------------------------------
# Wrapper helpers
# -----------------------------------------------------------------------------
def prepare_encoder_weight(wt):
    """One-time (init-time) weight prep: zero-pad F to a lane multiple of 128
    and cast to bf16.  Hoist this out of the per-training-step path; the zero
    feature columns contribute nothing to the gradient, so padding is exact."""
    assert wt.ndim == 2, "linear online_network weight must have shape (D, F)"
    D, F = wt.shape
    F_pad = _round_up(max(F, 128), 128)
    w = wt.astype(jnp.float32)
    if F_pad != F:
        w = jnp.pad(w, ((0, 0), (0, F_pad - F)))
    return w.astype(jnp.bfloat16), int(F)


def _vmem_budget_bytes():
    # Generation-aware VMEM budget (v5e/v6e: 128 MiB physical, v7x: 64 MiB).
    try:
        cap = int(pltpu.get_tpu_info().vmem_capacity_bytes)
    except Exception:
        cap = 64 << 20                     # conservative default (v7x per-core)
    return max(32 << 20, int(cap * 0.80))


_WEIGHT_TOO_BIG = (
    "online_network weight ({:.1f} MiB resident) leaves no room for row tiles "
    "within the {:.0f} MiB VMEM budget; a D-tiled weight path is required for "
    "encoders this large.")


def _plan_tiles(B, D, F_pad, block_b, weight_buffers):
    """Pick the batch-row tile so weight + pipeline buffers + temps fit VMEM."""
    vmem_budget = _vmem_budget_bytes()
    w_bytes = weight_buffers * D * F_pad * 2          # resident bf16 weight
    # per row: x/out f32 + d bf16, double-buffered, plus f32 in-kernel temps.
    row_bytes = (2 * (4 + 2 + 4) + 10) * D + 8 * F_pad
    avail = vmem_budget - w_bytes - (4 << 20)

    # TODO(synk): add a D-tiled (reduction-grid) weight path instead of raising
    # when the resident weight overruns VMEM (large D*F regime on v7x).
    if B <= 8:
        if B * row_bytes > avail:
            raise ValueError(_WEIGHT_TOO_BIG.format(w_bytes / 2**20,
                                                    vmem_budget / 2**20))
        return int(B), 1, int(vmem_budget)

    tm_cap = avail // row_bytes
    if tm_cap < 8:
        raise ValueError(_WEIGHT_TOO_BIG.format(w_bytes / 2**20,
                                                vmem_budget / 2**20))
    tm_cap = int(tm_cap // 8) * 8
    block_b = max(8, (int(block_b) // 8) * 8)
    # Target >= 2 grid steps so both v7x TensorCores get work and the pipeline
    # overlaps prefetch/writeback even at moderate batch sizes.
    tm = min(tm_cap, block_b, _round_up(pl.cdiv(B, 2), 8))
    if tm >= 16:
        tm = (tm // 16) * 16               # bf16-friendly sublane multiple
    grid_steps = pl.cdiv(B, tm)            # partial last block handled by Pallas
    return int(tm), int(grid_steps), int(vmem_budget)


def _run_kernel(kernel, x_flat, d_flat, wt_bf, *, tm, grid_steps, vmem_limit,
                single_buffer_weight):
    B, D = x_flat.shape
    Dw, F_pad = wt_bf.shape
    weight_kwargs = (dict(pipeline_mode=pl.Buffered(1))
                     if single_buffer_weight else {})
    return pl.pallas_call(
        kernel,
        out_shape=jax.ShapeDtypeStruct((B, D), jnp.float32),
        grid=(grid_steps,),
        in_specs=[
            pl.BlockSpec((tm, D), lambda i: (i, 0)),             # x rows (f32)
            pl.BlockSpec((tm, D), lambda i: (i, 0)),             # d0 rows (bf16)
            pl.BlockSpec((Dw, F_pad), lambda i: (0, 0),          # Wt, resident
                         **weight_kwargs),
        ],
        out_specs=pl.BlockSpec((tm, D), lambda i: (i, 0)),
        compiler_params=pltpu.CompilerParams(
            dimension_semantics=("parallel",),
            vmem_limit_bytes=vmem_limit),
    )(x_flat, d_flat, wt_bf)


def adv_aug(x, d0, weight, *, n_power=1, xi=0.01, epsilon=1.0, block_b=256,
            approx_recip=True):
    """Pallas implementation of AdvAug.forward(X) with a linear online_network.

    `weight` is either the raw (D, F) encoder weight or the tuple returned by
    `prepare_encoder_weight` (preferred for repeated calls)."""
    B = x.shape[0]
    D = x.size // B
    if isinstance(weight, tuple):
        wt_bf, F = weight
    else:
        wt_bf, F = prepare_encoder_weight(weight)
    assert wt_bf.shape[0] == D, "online_network weight rows must equal C*H*W"
    F_pad = wt_bf.shape[1]

    # mse_scale uses the FULL batch and TRUE feature dim (not tile / pad sizes).
    mse_scale = 2.0 / float(B * F)

    # No D padding (Mosaic masks any ragged lane tail in-kernel), so there is
    # no extra full-HBM pad pass over (B, D).  d0 ships as bf16 (direction-only
    # noise); x and the output stay f32.
    x_flat = x.reshape(B, D).astype(jnp.float32)
    d_flat = d0.reshape(B, D).astype(jnp.bfloat16)

    kernel = functools.partial(
        _adv_aug_kernel,
        n_power=int(n_power), xi=float(xi), epsilon=float(epsilon),
        mse_scale=mse_scale, approx_recip=bool(approx_recip))

    # TODO(synk): optionally generate d0 in-kernel via pltpu.prng_seed /
    # pltpu.prng_random_bits (drops this input stream entirely); kept as an
    # explicit input so the result is checkable against the deterministic ref.
    try:
        tm, grid_steps, vmem_limit = _plan_tiles(B, D, F_pad, block_b,
                                                 weight_buffers=1)
        out_flat = _run_kernel(kernel, x_flat, d_flat, wt_bf, tm=tm,
                               grid_steps=grid_steps, vmem_limit=vmem_limit,
                               single_buffer_weight=True)
    except ValueError:
        raise
    except Exception:
        # Fallback if pipeline_mode=pl.Buffered(1) is unsupported here: re-plan
        # for a double-buffered weight and drop the pipeline_mode hint.
        tm, grid_steps, vmem_limit = _plan_tiles(B, D, F_pad, block_b,
                                                 weight_buffers=2)
        out_flat = _run_kernel(kernel, x_flat, d_flat, wt_bf, tm=tm,
                               grid_steps=grid_steps, vmem_limit=vmem_limit,
                               single_buffer_weight=False)

    return out_flat.reshape(x.shape)


def adv_aug_ref(x, d0, wt, *, n_power=1, xi=0.01, epsilon=1.0):
    """Pure-JAX f32 reference mirroring the PyTorch semantics (linear encoder)."""
    B = x.shape[0]
    D = x.size // B
    F = wt.shape[1]
    xf = x.reshape(B, D).astype(jnp.float32)
    d = d0.reshape(B, D).astype(jnp.float32)
    for _ in range(n_power):
        nrm = jnp.sqrt(jnp.sum(d * d, axis=1, keepdims=True))
        d_n = xi * (d / (nrm + 1e-8))
        f = d_n @ wt
        d = (2.0 / (B * F)) * (f @ wt.T)
    nrm = jnp.sqrt(jnp.sum(d * d, axis=1, keepdims=True))
    return (xf + epsilon * (d / (nrm + 1e-8))).reshape(x.shape)


if __name__ == "__main__":
    key = jax.random.PRNGKey(0)
    kx, kd, kw = jax.random.split(key, 3)

    B, C, H, W = 2, 4, 16, 16            # small NCHW input
    F = 32                               # feature dim of synthetic online_network
    D = C * H * W

    x = jax.random.normal(kx, (B, C, H, W), dtype=jnp.float32)
    d0 = jax.random.normal(kd, (B, C, H, W), dtype=jnp.float32)   # torch.randn_like(x)
    wt = 0.05 * jax.random.normal(kw, (D, F), dtype=jnp.float32)  # linear encoder weight

    # One-time weight prep, hoisted out of the per-step path.
    prepared = prepare_encoder_weight(wt)

    out = adv_aug(x, d0, prepared, n_power=1, xi=0.01, epsilon=1.0)
    out = jax.block_until_ready(out)
    ref = adv_aug_ref(x, d0, wt, n_power=1, xi=0.01, epsilon=1.0)
    assert out.shape == x.shape and out.dtype == jnp.float32
    # bf16 MXU operands / bf16 d0 / EUP approx reciprocals -> slightly loose tol.
    assert jnp.allclose(out, ref, rtol=5e-3, atol=5e-3), "kernel/ref mismatch (n_power=1)"

    out2 = jax.block_until_ready(adv_aug(x, d0, prepared, n_power=2))
    ref2 = adv_aug_ref(x, d0, wt, n_power=2)
    assert jnp.allclose(out2, ref2, rtol=1e-2, atol=1e-2), "kernel/ref mismatch (n_power=2)"

    print("KERNEL_OK")
</pallas_src>

<mosaic_0001>
module attributes {stable_mosaic.version = 11 : i64} {
  func.func @_adv_aug_kernel(%arg0: i32, %arg1: memref<2x1024xf32, #tpu.memory_space<vmem>>, %arg2: memref<2x1024xbf16, #tpu.memory_space<vmem>>, %arg3: memref<1024x128xbf16, #tpu.memory_space<vmem>>, %arg4: memref<2x1024xf32, #tpu.memory_space<vmem>>) attributes {dimension_semantics = [#tpu.dimension_semantics<parallel>], iteration_bounds = array<i64: 1>, scalar_prefetch = 0 : i64, scratch_operands = 0 : i64, tpu.core_type = #tpu.core_type<tc>, window_params = [{transform_indices = @transform_0, window_bounds = array<i64: 2, 1024>}, {transform_indices = @transform_1, window_bounds = array<i64: 2, 1024>}, {pipeline_mode = #tpu.pipeline_mode<synchronous>, transform_indices = @transform_2, window_bounds = array<i64: 1024, 128>}, {transform_indices = @transform_3, window_bounds = array<i64: 2, 1024>}]} {
    %c0 = arith.constant 0 : index
    %c0_0 = arith.constant 0 : index
    %0 = vector.load %arg3[%c0, %c0_0] : memref<1024x128xbf16, #tpu.memory_space<vmem>>, vector<1024x128xbf16>
    %c0_1 = arith.constant 0 : index
    %c0_2 = arith.constant 0 : index
    %1 = vector.load %arg2[%c0_1, %c0_2] : memref<2x1024xbf16, #tpu.memory_space<vmem>>, vector<2x1024xbf16>
    %2 = arith.extf %1 : vector<2x1024xbf16> to vector<2x1024xf32>
    %3 = arith.mulf %2, %2 : vector<2x1024xf32>
    %cst = arith.constant dense<0.000000e+00> : vector<2xf32>
    %4 = vector.multi_reduction <add>, %3, %cst [1] : vector<2x1024xf32> to vector<2xf32>
    %5 = vector.shape_cast %4 : vector<2xf32> to vector<2x1xf32>
    %6 = math.sqrt %5 : vector<2x1xf32>
    %cst_3 = arith.constant 0.00999999977 : f32
    %7 = vector.broadcast %cst_3 : f32 to vector<2x1024xf32>
    %8 = arith.mulf %7, %2 : vector<2x1024xf32>
    %cst_4 = arith.constant 9.99999993E-9 : f32
    %9 = vector.broadcast %cst_4 : f32 to vector<2x1xf32>
    %10 = arith.addf %6, %9 : vector<2x1xf32>
    %11 = tpu.reciprocal %10 {approx = true} : vector<2x1xf32> -> vector<2x1xf32>
    %12 = vector.broadcast %11 : vector<2x1xf32> to vector<2x1024xf32>
    %13 = arith.mulf %8, %12 : vector<2x1024xf32>
    %14 = arith.truncf %13 : vector<2x1024xf32> to vector<2x1024xbf16>
    %cst_5 = arith.constant dense<0.000000e+00> : vector<2x128xf32>
    %15 = tpu.matmul %14, %0, %cst_5 {dimension_numbers = #tpu.dot_dimension_numbers<[1], [0], [0], [1], [0, 0, 1, 1], [], []>} : vector<2x1024xbf16>, vector<1024x128xbf16>, vector<2x128xf32> -> vector<2x128xf32>
    %16 = arith.truncf %15 : vector<2x128xf32> to vector<2x128xbf16>
    %cst_6 = arith.constant dense<0.000000e+00> : vector<2x1024xf32>
    %17 = tpu.matmul %16, %0, %cst_6 {dimension_numbers = #tpu.dot_dimension_numbers<[1], [1], [0], [0], [0, 0, 1, 0], [], []>} : vector<2x128xbf16>, vector<1024x128xbf16>, vector<2x1024xf32> -> vector<2x1024xf32>
    %cst_7 = arith.constant 3.125000e-02 : f32
    %18 = vector.broadcast %cst_7 : f32 to vector<2x1024xf32>
    %19 = arith.mulf %18, %17 : vector<2x1024xf32>
    %20 = arith.mulf %19, %19 : vector<2x1024xf32>
    %cst_8 = arith.constant dense<0.000000e+00> : vector<2xf32>
    %21 = vector.multi_reduction <add>, %20, %cst_8 [1] : vector<2x1024xf32> to vector<2xf32>
    %22 = vector.shape_cast %21 : vector<2xf32> to vector<2x1xf32>
    %23 = math.sqrt %22 : vector<2x1xf32>
    %c0_9 = arith.constant 0 : index
    %c0_10 = arith.constant 0 : index
    %24 = vector.load %arg1[%c0_9, %c0_10] : memref<2x1024xf32, #tpu.memory_space<vmem>>, vector<2x1024xf32>
    %cst_11 = arith.constant 1.000000e+00 : f32
    %25 = vector.broadcast %cst_11 : f32 to vector<2x1024xf32>
    %26 = arith.mulf %25, %19 : vector<2x1024xf32>
    %cst_12 = arith.constant 9.99999993E-9 : f32
    %27 = vector.broadcast %cst_12 : f32 to vector<2x1xf32>
    %28 = arith.addf %23, %27 : vector<2x1xf32>
    %29 = tpu.reciprocal %28 {approx = true} : vector<2x1xf32> -> vector<2x1xf32>
    %30 = vector.broadcast %29 : vector<2x1xf32> to vector<2x1024xf32>
    %31 = arith.mulf %26, %30 : vector<2x1024xf32>
    %32 = arith.addf %24, %31 : vector<2x1024xf32>
    %c0_13 = arith.constant 0 : index
    %c0_14 = arith.constant 0 : index
    %33 = vector.load %arg4[%c0_13, %c0_14] : memref<2x1024xf32, #tpu.memory_space<vmem>>, vector<2x1024xf32>
    tpu.vector_store %arg4[%c0_13, %c0_14], %32 {strides = array<i32>} : memref<2x1024xf32, #tpu.memory_space<vmem>>, vector<2x1024xf32>,
    return
  }
  func.func @transform_0(%arg0: i32) -> (i32, i32) {
    %c0_i32 = arith.constant 0 : i32
    %c0_i32_0 = arith.constant 0 : i32
    return %arg0, %c0_i32 : i32, i32
  }
  func.func @transform_1(%arg0: i32) -> (i32, i32) {
    %c0_i32 = arith.constant 0 : i32
    %c0_i32_0 = arith.constant 0 : i32
    return %arg0, %c0_i32 : i32, i32
  }
  func.func @transform_2(%arg0: i32) -> (i32, i32) {
    %c0_i32 = arith.constant 0 : i32
    %c0_i32_0 = arith.constant 0 : i32
    %c0_i32_1 = arith.constant 0 : i32
    return %c0_i32, %c0_i32_0 : i32, i32
  }
  func.func @transform_3(%arg0: i32) -> (i32, i32) {
    %c0_i32 = arith.constant 0 : i32
    %c0_i32_0 = arith.constant 0 : i32
    return %arg0, %c0_i32 : i32, i32
  }
}

module attributes {stable_mosaic.version = 11 : i64} {
  func.func @_adv_aug_kernel(%arg0: i32, %arg1: memref<2x1024xf32, #tpu.memory_space<vmem>>, %arg2: memref<2x1024xbf16, #tpu.memory_space<vmem>>, %arg3: memref<1024x128xbf16, #tpu.memory_space<vmem>>, %arg4: memref<2x1024xf32, #tpu.memory_space<vmem>>) attributes {dimension_semantics = [#tpu.dimension_semantics<parallel>], iteration_bounds = array<i64: 1>, scalar_prefetch = 0 : i64, scratch_operands = 0 : i64, tpu.core_type = #tpu.core_type<tc>, window_params = [{transform_indices = @transform_0, window_bounds = array<i64: 2, 1024>}, {transform_indices = @transform_1, window_bounds = array<i64: 2, 1024>}, {pipeline_mode = #tpu.pipeline_mode<synchronous>, transform_indices = @transform_2, window_bounds = array<i64: 1024, 128>}, {transform_indices = @transform_3, window_bounds = array<i64: 2, 1024>}]} {
    %c0 = arith.constant 0 : index
    %c0_0 = arith.constant 0 : index
    %0 = vector.load %arg3[%c0, %c0_0] : memref<1024x128xbf16, #tpu.memory_space<vmem>>, vector<1024x128xbf16>
    %c0_1 = arith.constant 0 : index
    %c0_2 = arith.constant 0 : index
    %1 = vector.load %arg2[%c0_1, %c0_2] : memref<2x1024xbf16, #tpu.memory_space<vmem>>, vector<2x1024xbf16>
    %2 = arith.extf %1 : vector<2x1024xbf16> to vector<2x1024xf32>
    %3 = arith.mulf %2, %2 : vector<2x1024xf32>
    %cst = arith.constant dense<0.000000e+00> : vector<2xf32>
    %4 = vector.multi_reduction <add>, %3, %cst [1] : vector<2x1024xf32> to vector<2xf32>
    %5 = vector.shape_cast %4 : vector<2xf32> to vector<2x1xf32>
    %6 = math.sqrt %5 : vector<2x1xf32>
    %cst_3 = arith.constant 0.00999999977 : f32
    %7 = vector.broadcast %cst_3 : f32 to vector<2x1024xf32>
    %8 = arith.mulf %7, %2 : vector<2x1024xf32>
    %cst_4 = arith.constant 9.99999993E-9 : f32
    %9 = vector.broadcast %cst_4 : f32 to vector<2x1xf32>
    %10 = arith.addf %6, %9 : vector<2x1xf32>
    %11 = tpu.reciprocal %10 {approx = true} : vector<2x1xf32> -> vector<2x1xf32>
    %12 = vector.broadcast %11 : vector<2x1xf32> to vector<2x1024xf32>
    %13 = arith.mulf %8, %12 : vector<2x1024xf32>
    %14 = arith.truncf %13 : vector<2x1024xf32> to vector<2x1024xbf16>
    %cst_5 = arith.constant dense<0.000000e+00> : vector<2x128xf32>
    %15 = tpu.matmul %14, %0, %cst_5 {dimension_numbers = #tpu.dot_dimension_numbers<[1], [0], [0], [1], [0, 0, 1, 1], [], []>} : vector<2x1024xbf16>, vector<1024x128xbf16>, vector<2x128xf32> -> vector<2x128xf32>
    %16 = arith.truncf %15 : vector<2x128xf32> to vector<2x128xbf16>
    %cst_6 = arith.constant dense<0.000000e+00> : vector<2x1024xf32>
    %17 = tpu.matmul %16, %0, %cst_6 {dimension_numbers = #tpu.dot_dimension_numbers<[1], [1], [0], [0], [0, 0, 1, 0], [], []>} : vector<2x128xbf16>, vector<1024x128xbf16>, vector<2x1024xf32> -> vector<2x1024xf32>
    %cst_7 = arith.constant 3.125000e-02 : f32
    %18 = vector.broadcast %cst_7 : f32 to vector<2x1024xf32>
    %19 = arith.mulf %18, %17 : vector<2x1024xf32>
    %20 = arith.mulf %19, %19 : vector<2x1024xf32>
    %cst_8 = arith.constant dense<0.000000e+00> : vector<2xf32>
    %21 = vector.multi_reduction <add>, %20, %cst_8 [1] : vector<2x1024xf32> to vector<2xf32>
    %22 = vector.shape_cast %21 : vector<2xf32> to vector<2x1xf32>
    %23 = math.sqrt %22 : vector<2x1xf32>
    %c0_9 = arith.constant 0 : index
    %c0_10 = arith.constant 0 : index
    %24 = vector.load %arg1[%c0_9, %c0_10] : memref<2x1024xf32, #tpu.memory_space<vmem>>, vector<2x1024xf32>
    %cst_11 = arith.constant 1.000000e+00 : f32
    %25 = vector.broadcast %cst_11 : f32 to vector<2x1024xf32>
    %26 = arith.mulf %25, %19 : vector<2x1024xf32>
    %cst_12 = arith.constant 9.99999993E-9 : f32
    %27 = vector.broadcast %cst_12 : f32 to vector<2x1xf32>
    %28 = arith.addf %23, %27 : vector<2x1xf32>
    %29 = tpu.reciprocal %28 {approx = true} : vector<2x1xf32> -> vector<2x1xf32>
    %30 = vector.broadcast %29 : vector<2x1xf32> to vector<2x1024xf32>
    %31 = arith.mulf %26, %30 : vector<2x1024xf32>
    %32 = arith.addf %24, %31 : vector<2x1024xf32>
    %c0_13 = arith.constant 0 : index
    %c0_14 = arith.constant 0 : index
    %33 = vector.load %arg4[%c0_13, %c0_14] : memref<2x1024xf32, #tpu.memory_space<vmem>>, vector<2x1024xf32>
    tpu.vector_store %arg4[%c0_13, %c0_14], %32 {strides = array<i32>} : memref<2x1024xf32, #tpu.memory_space<vmem>>, vector<2x1024xf32>,
    return
  }
  func.func @transform_0(%arg0: i32) -> (i32, i32) {
    %c0_i32 = arith.constant 0 : i32
    %c0_i32_0 = arith.constant 0 : i32
    return %arg0, %c0_i32 : i32, i32
  }
  func.func @transform_1(%arg0: i32) -> (i32, i32) {
    %c0_i32 = arith.constant 0 : i32
    %c0_i32_0 = arith.constant 0 : i32
    return %arg0, %c0_i32 : i32, i32
  }
  func.func @transform_2(%arg0: i32) -> (i32, i32) {
    %c0_i32 = arith.constant 0 : i32
    %c0_i32_0 = arith.constant 0 : i32
    %c0_i32_1 = arith.constant 0 : i32
    return %c0_i32, %c0_i32_0 : i32, i32
  }
  func.func @transform_3(%arg0: i32) -> (i32, i32) {
    %c0_i32 = arith.constant 0 : i32
    %c0_i32_0 = arith.constant 0 : i32
    return %arg0, %c0_i32 : i32, i32
  }
}

</mosaic_0001>

<bundles_post_ra>
// kernel: tpu_custom_call.1
= control target key start
LH: loop header
LB: loop body
LE: loop exit
PB: predicated region body
PF: predicated region fallthrough
CT: control target
= control target key end

     0   :  { %8 = vsyncpa [#allocation3], 0  ;;  %s1889_s0 = inlined_call_operand.hbm [shape: f32[2,1024], index: 0, kind: input, shape index: {}]   ;;  %s1890_s1 = inlined_call_operand.hbm [shape: bf16[2,1024], index: 1, kind: input, shape index: {}]   ;;  %s1891_s2 = inlined_call_operand.hbm [shape: bf16[1024,128], index: 2, kind: input, shape index: {}]   ;;  %s1892_s3 = inlined_call_operand.hbm [shape: f32[2,1024], index: 3, kind: output, shape index: {}]  }
   0x1   :  { %9 = vsyncpa [#allocation6], 0 }
   0x2   :  { %10 = vsyncpa [#allocation4], 0  ;;  %s1537_s12 = smov [#allocation5]   ;;  %s1538_s14 = smov [#allocation2]  }
   0x3   :  { %s27_s13 = sshll.u32 %s1537_s12, 4  ;;  %s17_s15 = sshll.u32 %s1538_s14, 4  ;;  %s28_s13 = int_to_ptr.vmem [resolvable:$true] %s27_s13  ;;  %s18_s15 = int_to_ptr.vmem [resolvable:$true] %s17_s15 }
   0x4   :  { %s1459_s16 = scalar_lea.vmem %s28_s13, 128  ;;  %p1464_p1 = scmp.lt.s32.totalorder %s28_s13, %s28_s13 }
   0x5   :  { %p1460_p0 = scmp.ne.s32.totalorder %s28_s13, %s1459_s16  ;;  %p1465_p2 = scmp.lt.s32.totalorder %s1459_s16, %s1459_s16 }
   0x7   :  { %p1466_p3 = por %p1465_p2, %p1464_p1 }
   0x9   :  { %p1467_p4 = pnand %p1466_p3, %p1460_p0 }
   0xb   :  { %1470 = shalt.err (!%p1467_p4)
}
   0xc   :  { %30 = dma.hbm_to_vmem [thread:$0]  %s1890_s1, 128, %s28_s13, [#allocation6]  }
   0xd   :  { %s1479_s19 = scalar_lea.vmem %s18_s15, 256  ;;  %p1484_p6 = scmp.lt.s32.totalorder %s18_s15, %s18_s15 }
   0xe   :  { %p1480_p5 = scmp.ne.s32.totalorder %s18_s15, %s1479_s19  ;;  %p1485_p7 = scmp.lt.s32.totalorder %s1479_s19, %s1479_s19 }
  0x10   :  { %p1486_p8 = por %p1485_p7, %p1484_p6 }
  0x12   :  { %p1487_p9 = pnand %p1486_p8, %p1480_p5 }
  0x14   :  { %1490 = shalt.err (!%p1487_p9)
}
  0x15   :  { %20 = dma.hbm_to_vmem [thread:$0]  %s1889_s0, 256, %s18_s15, [#allocation3]  }
  0x16   :  { %s1539_s22 = smov [#allocation7]  }
  0x17   :  { %s36_s23 = sshll.u32 %s1539_s22, 4  ;;  %s37_s23 = int_to_ptr.vmem [resolvable:$true] %s36_s23 }
  0x18   :  { %s1499_s24 = scalar_lea.vmem %s37_s23, 8192  ;;  %p1504_p11 = scmp.lt.s32.totalorder %s37_s23, %s37_s23 }
  0x19   :  { %p1500_p10 = scmp.ne.s32.totalorder %s37_s23, %s1499_s24  ;;  %p1505_p12 = scmp.lt.s32.totalorder %s1499_s24, %s1499_s24 }
  0x1b   :  { %p1506_p13 = por %p1505_p12, %p1504_p11 }
  0x1d   :  { %p1507_p0 = pnand %p1506_p13, %p1500_p10 }
  0x1f   :  { %1510 = shalt.err (!%p1507_p0)
}
  0x20   :  { %s1540_s1 = smov 64   ;;  %s1541_s25 = smov 4  }
  0x21   :  { %42 = dma.hbm_to_vmem [thread:$0]  %s1891_s2, 8192, %s37_s23, [#allocation6], %s1540_s1, %s1540_s1, %s1541_s25  }
  0x22   :  { %1531 = dma.done.wait [#allocation3], 256  }
  0x23   :  { %1532 = vsyncadd [#allocation3], 4294967040 }
  0x24   :  { %1533 = dma.done.wait [#allocation6], 8320  }
  0x25   :  { %1534 = vsyncadd [#allocation6], 4294958976  ;;  %v192_v0 = vlaneseq  ;;  %v1542_v1 = vmov 1983009808   ;;  %v181_v5 = vld [vmem:[#allocation5] sm:$0xff]  ;;  %vm230_vm0 = vcmask 1041408  }
  0x26   :  { %v190_v2 = vunpack.c.l.s4 %v1542_v1  ;;  %v1576_v6 = vunpack.c.l.bf16 %v181_v5  ;;  %v1578_v7 = vunpack.c.h.bf16 %v181_v5  ;;  %v1599_v36 = vld [vmem:[#allocation7 + $0x78] sm:$0xff]   ;;  %v1610_v40 = vld [vmem:[#allocation7 + $0x70] sm:$0xff]   ;;  %v1622_v44 = vld [vmem:[#allocation7 + $0x68] sm:$0xff]   ;;  %s1544_s0 = smov [#allocation8]  }
  0x27   :  { %v1574_v4 = vshrl.u32 %v192_v0, 7  ;;  %v1601_v37 = vld [vmem:[#allocation7 + $0x38] sm:$0xff]   ;;  %1211 = vmatprep.subr.bf16.mxu0 %v1599_v36  ;;  %v1613_v41 = vld [vmem:[#allocation7 + $0x30] sm:$0xff]   ;;  %v1625_v45 = vld [vmem:[#allocation7 + $0x28] sm:$0xff]   ;;  %s1137_s2 = sshll.u32 %s1544_s0, 4  ;;  %s1138_s2 = int_to_ptr.vmem [resolvable:$true] %s1137_s2 }
  0x28   :  { %v191_v3 = vunpack.c.0.s8 %v190_v2  ;;  %v184_v9 = vmul.f32 %v1576_v6, %v1576_v6  ;;  %v185_v10 = vmul.f32 %v1578_v7, %v1578_v7  ;;  %v1604_v38 = vld [vmem:[#allocation7 + $0xf8] sm:$0xff]   ;;  %1212 = vmatpush3.bf16.msra.mxu0 %v1601_v37  ;;  %v1616_v42 = vld [vmem:[#allocation7 + $0xf0] sm:$0xff]   ;;  %v1628_v46 = vld [vmem:[#allocation7 + $0xe8] sm:$0xff]   ;;  %s1511_s28 = scalar_lea.vmem %s1138_s2, 256  ;;  %p1516_p2 = scmp.lt.s32.totalorder %s1138_s2, %s1138_s2 }
  0x29   :  { %v1607_v39 = vld [vmem:[#allocation7 + $0xb8] sm:$0xff]   ;;  %1233 = vmatprep.subr.bf16.mxu1 %v1604_v38  ;;  %1213 = vmatprep.subr.bf16.mxu0 %v1610_v40  ;;  %v1619_v43 = vld [vmem:[#allocation7 + $0xb0] sm:$0xff]   ;;  %v1630_v47 = vld [vmem:[#allocation7 + $0xa8] sm:$0xff]   ;;  %p1512_p1 = scmp.ne.s32.totalorder %s1138_s2, %s1511_s28  ;;  %p1517_p3 = scmp.lt.s32.totalorder %s1511_s28, %s1511_s28 }
  0x2a   :  { %v1581_v8 = vsub.s32 %v191_v3, %v1574_v4  ;;  %v188_v11 = vcombine.high %v184_v9, %v184_v9  ;;  %v205_v13 = vcombine.high %v185_v10, %v185_v10  ;;  %1234 = vmatpush3.bf16.msra.mxu1 %v1607_v39  ;;  %v1632_v48 = vld [vmem:[#allocation7 + $0x60] sm:$0xff]   ;;  %v1641_v51 = vld [vmem:[#allocation7 + $0x58] sm:$0xff]   ;;  %v1653_v55 = vld [vmem:[#allocation7 + $0x50] sm:$0xff]  }
  0x2b   :  { %1235 = vmatprep.subr.bf16.mxu1 %v1616_v42  ;;  %v1635_v49 = vld [vmem:[#allocation7 + $0x20] sm:$0xff]   ;;  %v1647_v53 = vld [vmem:[#allocation7 + $0xd8] sm:$0xff]   ;;  %v1659_v57 = vld [vmem:[#allocation7 + $0xd0] sm:$0xff]   ;;  %p1518_p4 = por %p1517_p3, %p1516_p2 }
  0x2c   :  { %1899 = vst [vmem:[#allocation12_spill] sm:$0xff] %v1581_v8  ;;  %v195_v12 = vrot.slane %v184_v9, %v1581_v8  ;;  %v212_v14 = vrot.slane %v185_v10, %v1581_v8  ;;  %v202_v15 = vrot.slane %v188_v11, %v1581_v8  ;;  %v219_v17 = vrot.slane %v205_v13, %v1581_v8  ;;  %v1637_v50 = vld [vmem:[#allocation7 + $0xe0] sm:$0xff]   ;;  %v1650_v54 = vld [vmem:[#allocation7 + $0x18] sm:$0xff]   ;;  %v1662_v58 = vld [vmem:[#allocation7 + $0x10] sm:$0xff]  }
  0x2d   :  { %1214 = vmatpush3.bf16.msra.mxu0 %v1613_v41  ;;  %v1644_v52 = vld [vmem:[#allocation7 + $0xa0] sm:$0xff]   ;;  %v1656_v56 = vld [vmem:[#allocation7 + $0x98] sm:$0xff]   ;;  %v1665_v59 = vld [vmem:[#allocation7 + $0x48] sm:$0xff]   ;;  %p1519_p5 = pnand %p1518_p4, %p1512_p1 }
  0x2e   :  { %v203_v16 = vcombine.high %v195_v12, %v195_v12  ;;  %v220_v18 = vcombine.high %v212_v14, %v212_v14  ;;  %v231_v19 = vsel %vm230_vm0, %v195_v12, 0.0  ;;  %v238_v20 = vsel %vm230_vm0, %v212_v14, 0.0  ;;  %1236 = vmatpush3.bf16.msra.mxu1 %v1619_v43  ;;  %1215 = vmatprep.subr.bf16.mxu0 %v1622_v44  ;;  %v1668_v60 = vld [vmem:[#allocation7 + $0x90] sm:$0xff]   ;;  %v1671_v61 = vld [vmem:[#allocation7 + $0xc8] sm:$0xff]   ;;  %v1677_v63 = vld [vmem:[#allocation7 + $0x40] sm:$0xff]  }
  0x2f   :  { %v204_v21 = vcombine.high %v202_v15, %v202_v15  ;;  %v221_v22 = vcombine.high %v219_v17, %v219_v17  ;;  %v234_v24 = vsel %vm230_vm0, %v202_v15, 0.0  ;;  %v242_v27 = vsel %vm230_vm0, %v219_v17, 0.0  ;;  %1237 = vmatprep.subr.bf16.mxu1 %v1628_v46  ;;  %v1674_v62 = vld [vmem:[#allocation7 + $0x8] sm:$0xff]   ;;  %v1683_v1 = vld [vmem:[#allocation7 + $0xc0] sm:$0xff]   ;;  %v1694_v5 = vld [vmem:[#allocation7 + $0x178] sm:$0xff]  }
  0x30   :  { %v232_v23 = vsel %vm230_vm0, %v203_v16, 0.0  ;;  %v240_v26 = vsel %vm230_vm0, %v220_v18, 0.0  ;;  %v1680_v0 = vld [vmem:[#allocation7 + $0x88] sm:$0xff]   ;;  %v1686_v2 = vld [vmem:[#allocation7] sm:$0xff]   ;;  %v1698_v9 = vld [vmem:[#allocation7 + $0x1f8] sm:$0xff]  }
  0x31   :  { %v233_v25 = vadd.f32 %v232_v23, %v231_v19  ;;  %v236_v28 = vsel %vm230_vm0, %v204_v21, 0.0  ;;  %v244_v29 = vsel %vm230_vm0, %v221_v22, 0.0  ;;  %1216 = vmatpush3.bf16.msra.mxu0 %v1625_v45  ;;  %v1690_v3 = vld [vmem:[#allocation7 + $0x80] sm:$0xff]   ;;  %v1543_v17 = vmov 269488144  }
  0x32   :  { %1217 = vmatprep.subr.bf16.mxu0 %v1632_v48  ;;  %1238 = vmatpush3.bf16.msra.mxu1 %v1630_v47  ;;  %v261_v18 = vunpack.c.l.s4 %v1543_v17  ;;  %v255_v21 = vmul.f32 0.01, %v1576_v6  ;;  %v256_v22 = vmul.f32 0.01, %v1578_v7  ;;  %v1725_v17 = vld [vmem:[#allocation7 + $0x130] sm:$0xff]  }
  0x33   :  { %v235_v30 = vadd.f32 %v234_v24, %v233_v25  ;;  %1239 = vmatprep.subr.bf16.mxu1 %v1637_v50 }
  0x34   :  { %v262_v19 = vunpack.c.0.s8 %v261_v18 }
  0x35   :  { %v237_v31 = vadd.f32 %v236_v28, %v235_v30  ;;  %1218 = vmatpush3.bf16.msra.mxu0 %v1635_v49 }
  0x36   :  { %1219 = vmatprep.subr.bf16.mxu0 %v1641_v51  ;;  %1240 = vmatpush3.bf16.msra.mxu1 %v1644_v52 }
  0x37   :  { %v239_v32 = vadd.f32 %v238_v20, %v237_v31  ;;  %1241 = vmatprep.subr.bf16.mxu1 %v1647_v53  ;;  %v265_v20 = vsub.s32 %v262_v19, %v1574_v4  ;;  %v1727_v19 = vld [vmem:[#allocation7 + $0x168] sm:$0xff]  }
  0x39   :  { %v241_v33 = vadd.f32 %v240_v26, %v239_v32  ;;  %1220 = vmatpush3.bf16.msra.mxu0 %v1650_v54 }
  0x3a   :  { %1221 = vmatprep.subr.bf16.mxu0 %v1653_v55  ;;  %1242 = vmatpush3.bf16.msra.mxu1 %v1656_v56 }
  0x3b   :  { %v243_v34 = vadd.f32 %v242_v27, %v241_v33  ;;  %1243 = vmatprep.subr.bf16.mxu1 %v1659_v57  ;;  %v1714_v33 = vld [vmem:[#allocation7 + $0x138] sm:$0xff]  }
  0x3d   :  { %v245_v35 = vadd.f32 %v244_v29, %v243_v34  ;;  %1222 = vmatpush3.bf16.msra.mxu0 %v1662_v58 }
  0x3e   :  { %1223 = vmatprep.subr.bf16.mxu0 %v1665_v59  ;;  %1244 = vmatpush3.bf16.msra.mxu1 %v1668_v60 }
  0x3f   :  { %246 = vadd.xlane.f32.xlu0 %v245_v35  ;;  %1245 = vmatprep.subr.bf16.mxu1 %v1671_v61 }
  0x41   :  { %1224 = vmatpush3.bf16.msra.mxu0 %v1674_v62 }
  0x42   :  { %1225 = vmatprep.subr.bf16.mxu0 %v1677_v63  ;;  %1246 = vmatpush3.bf16.msra.mxu1 %v1680_v0 }
  0x43   :  { %1247 = vmatprep.subr.bf16.mxu1 %v1683_v1 }
  0x45   :  { %1226 = vmatpush3.bf16.msra.mxu0 %v1686_v2 }
  0x46   :  { %1248 = vmatpush3.bf16.msra.mxu1 %v1690_v3  ;;  %1255 = vmatprep.subr.bf16.mxu0 %v1694_v5 }
  0x47   :  { %1277 = vmatprep.subr.bf16.mxu1 %v1698_v9 }
  0xc8   :  { %v247_v10 = vpop.xlane.xlu0 %246 }
  0xc9   :  { %1443 = vrsqrt.f32 %v247_v10  ;;  %vm250_vm1 = vcmp.eq.f32.partialorder %v247_v10, inf  ;;  %v253_v13 = vand.u32 2147483648, %v247_v10  ;;  %vm252_vm2 = vcmp.eq.f32.partialorder %v247_v10, 0.0 }
  0xd6   :  { %v1444_v11 = vpop.eup %1443 }
  0xd7   :  { %v249_v12 = vmul.f32 %v1444_v11, %v247_v10 }
  0xd9   :  { %v251_v14 = vsel %vm250_vm1, %v247_v10, %v249_v12  ;;  %v1718_v12 = vld [vmem:[#allocation7 + $0x1b8] sm:$0xff]  }
  0xda   :  { %v254_v15 = vsel %vm252_vm2, %v253_v13, %v251_v14  ;;  %v1720_v13 = vld [vmem:[#allocation7 + $0x170] sm:$0xff]  }
  0xdb   :  { %v257_v16 = vadd.f32 1e-08, %v254_v15 }
  0xdd   :  { %1445 = vrcp.f32 %v257_v16  ;;  %v1722_v16 = vld [vmem:[#allocation7 + $0x1f0] sm:$0xff]  }
  0xea   :  { %v1446_v23 = vpop.eup %1445 }
  0xeb   :  { %v266_v24 = vrot.slane %v1446_v23, %v265_v20  ;;  %v1731_v20 = vld [vmem:[#allocation7 + $0x1b0] sm:$0xff]   ;;  %v1740_v23 = vld [vmem:[#allocation7 + $0x160] sm:$0xff]  }
  0xed   :  { %v268_v25 = vmul.f32 %v266_v24, %v255_v21  ;;  %v269_v26 = vmul.f32 %v266_v24, %v256_v22  ;;  %v1734_v21 = vld [vmem:[#allocation7 + $0x1e8] sm:$0xff]  }
  0xee   :  { %v1737_v22 = vld [vmem:[#allocation7 + $0x128] sm:$0xff]  }
  0xef   :  { %v279_v27 = vrot.slane %v268_v25, %v1581_v8  ;;  %v272_v28 = vcombine.high %v268_v25, %v268_v25  ;;  %v1706_v29 = vrot.slane %v269_v26, %v1581_v8  ;;  %v289_v30 = vcombine.high %v269_v26, %v269_v26  ;;  %v1743_v24 = vld [vmem:[#allocation7 + $0x1a8] sm:$0xff]   ;;  %v1746_v25 = vld [vmem:[#allocation7 + $0x1e0] sm:$0xff]  }
  0xf0   :  { %v1749_v26 = vld [vmem:[#allocation7 + $0x120] sm:$0xff]  }
  0xf1   :  { %v287_v31 = vcombine.high %v279_v27, %v279_v27  ;;  %v286_v32 = vrot.slane %v272_v28, %v1581_v8  ;;  %v304_v4 = vcombine.high %v1706_v29, %v1706_v29  ;;  %v1712_v6 = vrot.slane %v289_v30, %v1581_v8  ;;  %v1755_v28 = vld [vmem:[#allocation7 + $0x1a0] sm:$0xff]   ;;  %v1758_v30 = vld [vmem:[#allocation7 + $0x1d8] sm:$0xff]  }
  0xf2   :  { %v314_v35 = vpack.c.bf16 %v279_v27, %v279_v27  ;;  %v1752_v27 = vld [vmem:[#allocation7 + $0x158] sm:$0xff]   ;;  %v1794_v8 = vld [vmem:[#allocation7 + $0x1c0] sm:$0xff]  }
  0xf3   :  { %v315_v7 = vpack.c.bf16 %v287_v31, %v287_v31  ;;  %v288_v34 = vcombine.high %v286_v32, %v286_v32  ;;  %v305_v10 = vcombine.high %v1712_v6, %v1712_v6  ;;  %v319_v14 = vpack.c.bf16 %v304_v4, %v304_v4  ;;  %v1761_v31 = vld [vmem:[#allocation7 + $0x118] sm:$0xff]  }
  0xf4   :  { %v316_v15 = vpack.c.bf16 %v286_v32, %v286_v32  ;;  %v1764_v32 = vld [vmem:[#allocation7 + $0x150] sm:$0xff]   ;;  %v1767_v4 = vld [vmem:[#allocation7 + $0x198] sm:$0xff]  }
  0xf5   :  { %738 = vmatprep.mubr.bf16.mxu0 %v315_v7  ;;  %v317_v11 = vpack.c.bf16 %v288_v34, %v288_v34  ;;  %v321_v18 = vpack.c.bf16 %v305_v10, %v305_v10  ;;  %v1770_v7 = vld [vmem:[#allocation7 + $0x1d0] sm:$0xff]  }
  0xf6   :  { %739 = vmatmul.mubr.bf16.vlgmr.msra.gmra.mxu0 %v314_v35  ;;  %1900 = vst [vmem:[#allocation13_spill] sm:$0xff] %v1770_v7  ;;  %v1773_v34 = vld [vmem:[#allocation7 + $0x110] sm:$0xff]   ;;  %v1776_v35 = vld [vmem:[#allocation7 + $0x148] sm:$0xff]  }
  0xf7   :  { %1256 = vmatpush3.bf16.msra.mxu0 %v1714_v33  ;;  %778 = vmatprep.mubr.bf16.mxu1 %v317_v11  ;;  %1901 = vst [vmem:[#allocation14_spill] sm:$0xff] %v1773_v34  ;;  %1902 = vst [vmem:[#allocation15_spill] sm:$0xff] %v1776_v35  ;;  %v1779_v10 = vld [vmem:[#allocation7 + $0x190] sm:$0xff]   ;;  %v1782_v11 = vld [vmem:[#allocation7 + $0x1c8] sm:$0xff]  }
  0xf8   :  { %818 = vmatprep.mubr.bf16.mxu0 %v319_v14  ;;  %779 = vmatmul.mubr.bf16.vlgmr.msra.gmra.mxu1 %v316_v15  ;;  %v1785_v14 = vld [vmem:[#allocation7 + $0x108] sm:$0xff]   ;;  %v1788_v15 = vld [vmem:[#allocation7 + $0x140] sm:$0xff]  }
  0xf9   :  { %1278 = vmatpush3.bf16.msra.mxu1 %v1718_v12  ;;  %1257 = vmatprep.subr.bf16.mxu0 %v1720_v13  ;;  %1903 = vst [vmem:[#allocation16_spill] sm:$0xff] %v1785_v14 }
  0xfa   :  { %858 = vmatprep.mubr.bf16.mxu1 %v321_v18  ;;  %1279 = vmatprep.subr.bf16.mxu1 %v1722_v16  ;;  %v1791_v18 = vld [vmem:[#allocation7 + $0x188] sm:$0xff]  }
  0xfb   :  { %1258 = vmatpush3.bf16.msra.mxu0 %v1725_v17 }
  0xfc   :  { %1259 = vmatprep.subr.bf16.mxu0 %v1727_v19 }
  0xfd   :  { %1280 = vmatpush3.bf16.msra.mxu1 %v1731_v20 }
  0xfe   :  { %1281 = vmatprep.subr.bf16.mxu1 %v1734_v21 }
  0xff   :  { %1260 = vmatpush3.bf16.msra.mxu0 %v1737_v22 }
 0x100   :  { %1261 = vmatprep.subr.bf16.mxu0 %v1740_v23 }
 0x101   :  { %1282 = vmatpush3.bf16.msra.mxu1 %v1743_v24 }
 0x102   :  { %1283 = vmatprep.subr.bf16.mxu1 %v1746_v25 }
 0x103   :  { %1262 = vmatpush3.bf16.msra.mxu0 %v1749_v26 }
 0x104   :  { %1263 = vmatprep.subr.bf16.mxu0 %v1752_v27 }
 0x105   :  { %1284 = vmatpush3.bf16.msra.mxu1 %v1755_v28 }
 0x106   :  { %1285 = vmatprep.subr.bf16.mxu1 %v1758_v30 }
 0x107   :  { %1264 = vmatpush3.bf16.msra.mxu0 %v1761_v31 }
 0x108   :  { %1265 = vmatprep.subr.bf16.mxu0 %v1764_v32 }
 0x109   :  { %1286 = vmatpush3.bf16.msra.mxu1 %v1767_v4 }
 0x10a   :  { %1287 = vmatprep.subr.bf16.mxu1 %v1770_v7  ;;  %v1797_v7 = vld [vmem:[#allocation7 + $0x100] sm:$0xff]  }
 0x10b   :  { %1266 = vmatpush3.bf16.msra.mxu0 %v1773_v34  ;;  %v1801_v34 = vld [vmem:[#allocation7 + $0x180] sm:$0xff]  }
 0x10c   :  { %1267 = vmatprep.subr.bf16.mxu0 %v1776_v35  ;;  %v318_v35 = vpack.c.bf16 %v1706_v29, %v1706_v29 }
 0x10d   :  { %1288 = vmatpush3.bf16.msra.mxu1 %v1779_v10 }
 0x10e   :  { %1289 = vmatprep.subr.bf16.mxu1 %v1782_v11 }
 0x10f   :  { %1268 = vmatpush3.bf16.msra.mxu0 %v1785_v14  ;;  %v320_v14 = vpack.c.bf16 %v1712_v6, %v1712_v6 }
 0x110   :  { %1269 = vmatprep.subr.bf16.mxu0 %v1788_v15 }
 0x111   :  { %1290 = vmatpush3.bf16.msra.mxu1 %v1791_v18 }
 0x112   :  { %1291 = vmatprep.subr.bf16.mxu1 %v1794_v8 }
 0x113   :  { %1270 = vmatpush3.bf16.msra.mxu0 %v1797_v7 }
 0x114   :  { %1299 = vmatprep.subr.bf16.mxu0 %v1599_v36 }
 0x115   :  { %1292 = vmatpush3.bf16.msra.mxu1 %v1801_v34 }
 0x116   :  { %819 = vmatmul.mubr.bf16.vlgmr.msra.gmra.mxu0 %v318_v35  ;;  %1317 = vmatprep.subr.bf16.mxu1 %v1604_v38 }
 0x117   :  { %1300 = vmatpush3.bf16.xpose.msra.mxu0 %v1601_v37 }
 0x118   :  { %859 = vmatmul.mubr.bf16.vlgmr.msra.gmra.mxu1 %v320_v14  ;;  %1301 = vmatprep.subr.bf16.mxu0 %v1610_v40 }
 0x119   :  { %1318 = vmatpush3.bf16.xpose.msra.mxu1 %v1607_v39 }
 0x11a   :  { %1319 = vmatprep.subr.bf16.mxu1 %v1616_v42 }
 0x11f   :  { %1302 = vmatpush3.bf16.xpose.msra.mxu0 %v1613_v41 }
 0x120   :  { %1303 = vmatprep.subr.bf16.mxu0 %v1622_v44 }
 0x121   :  { %1320 = vmatpush3.bf16.xpose.msra.mxu1 %v1619_v43 }
 0x122   :  { %1321 = vmatprep.subr.bf16.mxu1 %v1628_v46 }
 0x127   :  { %1304 = vmatpush3.bf16.xpose.msra.mxu0 %v1625_v45 }
 0x128   :  { %1305 = vmatprep.subr.bf16.mxu0 %v1632_v48 }
 0x129   :  { %1322 = vmatpush3.bf16.xpose.msra.mxu1 %v1630_v47 }
 0x12a   :  { %1323 = vmatprep.subr.bf16.mxu1 %v1637_v50 }
 0x12f   :  { %1306 = vmatpush3.bf16.xpose.msra.mxu0 %v1635_v49 }
 0x130   :  { %1307 = vmatprep.subr.bf16.mxu0 %v1641_v51 }
 0x131   :  { %1324 = vmatpush3.bf16.xpose.msra.mxu1 %v1644_v52 }
 0x132   :  { %1325 = vmatprep.subr.bf16.mxu1 %v1647_v53 }
 0x137   :  { %1308 = vmatpush3.bf16.xpose.msra.mxu0 %v1650_v54 }
 0x138   :  { %1309 = vmatprep.subr.bf16.mxu0 %v1653_v55 }
 0x139   :  { %1326 = vmatpush3.bf16.xpose.msra.mxu1 %v1656_v56 }
 0x13a   :  { %1327 = vmatprep.subr.bf16.mxu1 %v1659_v57 }
 0x13f   :  { %1310 = vmatpush3.bf16.xpose.msra.mxu0 %v1662_v58 }
 0x140   :  { %1311 = vmatprep.subr.bf16.mxu0 %v1665_v59 }
 0x141   :  { %1328 = vmatpush3.bf16.xpose.msra.mxu1 %v1668_v60  ;;  %v1904_v60 = vld [vmem:[#allocation13_spill] sm:$0xff] }
 0x142   :  { %1329 = vmatprep.subr.bf16.mxu1 %v1671_v61  ;;  %v1905_v61 = vld [vmem:[#allocation14_spill] sm:$0xff] }
 0x147   :  { %1312 = vmatpush3.bf16.xpose.msra.mxu0 %v1674_v62  ;;  %v1906_v62 = vld [vmem:[#allocation15_spill] sm:$0xff] }
 0x148   :  { %1313 = vmatprep.subr.bf16.mxu0 %v1677_v63  ;;  %v1907_v63 = vld [vmem:[#allocation16_spill] sm:$0xff] }
 0x149   :  { %1330 = vmatpush3.bf16.xpose.msra.mxu1 %v1680_v0 }
 0x14a   :  { %1331 = vmatprep.subr.bf16.mxu1 %v1683_v1 }
 0x14f   :  { %1314 = vmatpush3.bf16.xpose.msra.mxu0 %v1686_v2 }
 0x150   :  { %1335 = vmatprep.subr.bf16.mxu0 %v1694_v5 }
 0x151   :  { %1332 = vmatpush3.bf16.xpose.msra.mxu1 %v1690_v3 }
 0x152   :  { %1353 = vmatprep.subr.bf16.mxu1 %v1698_v9 }
 0x1b6   :  { %v1227_v36 = vpop.f32.mrf.mxu0 }
 0x1b8   :  { %v1228_v37 = vpop.f32.mrf.mxu0  ;;  %v1249_v38 = vpop.f32.mrf.mxu1 }
 0x1b9   :  { %v1229_v46 = vadd.f32 %v1228_v37, %v1227_v36 }
 0x1ba   :  { %v1230_v39 = vpop.f32.mrf.mxu0  ;;  %v1250_v40 = vpop.f32.mrf.mxu1 }
 0x1bb   :  { %v1251_v44 = vadd.f32 %v1250_v40, %v1249_v38 }
 0x1bc   :  { %v1231_v41 = vpop.f32.mrf.mxu0  ;;  %v1252_v42 = vpop.f32.mrf.mxu1 }
 0x1bd   :  { %v781_v49 = vadd.f32 %v1251_v44, %v1229_v46 }
 0x1be   :  { %v1253_v43 = vpop.f32.mrf.mxu1 }
 0x1d6   :  { %v1271_v45 = vpop.f32.mrf.mxu0 }
 0x1d8   :  { %v1272_v47 = vpop.f32.mrf.mxu0  ;;  %v1293_v48 = vpop.f32.mrf.mxu1 }
 0x1d9   :  { %v1273_v50 = vadd.f32 %v1272_v47, %v1271_v45 }
 0x1da   :  { %v1274_v51 = vpop.f32.mrf.mxu0  ;;  %v1294_v52 = vpop.f32.mrf.mxu1 }
 0x1db   :  { %v821_v53 = vadd.f32 %v1273_v50, %v781_v49  ;;  %v1295_v54 = vadd.f32 %v1294_v52, %v1293_v48 }
 0x1dc   :  { %v1275_v55 = vpop.f32.mrf.mxu0  ;;  %v1296_v56 = vpop.f32.mrf.mxu1 }
 0x1dd   :  { %v861_v57 = vadd.f32 %v1295_v54, %v821_v53 }
 0x1de   :  { %v1297_v58 = vpop.f32.mrf.mxu1 }
 0x1df   :  { %v866_v59 = vpack.c.bf16 %v861_v57, %v861_v57 }
 0x1e1   :  { %1315 = vmatprep.mubr.bf16.mxu0 %v866_v59  ;;  %1333 = vmatprep.mubr.bf16.mxu1 %v866_v59 }
 0x1e2   :  { %1316 = vmatmul.mubr.bf16.vlgmr.msra.gmra.mxu0 %v866_v59  ;;  %1334 = vmatmul.mubr.bf16.vlgmr.msra.gmra.mxu1 %v866_v59 }
 0x1e3   :  { %1336 = vmatpush3.bf16.xpose.msra.mxu0 %v1714_v33  ;;  %1354 = vmatpush3.bf16.xpose.msra.mxu1 %v1718_v12 }
 0x1e4   :  { %1351 = vmatprep.mubr.bf16.mxu0 %v866_v59  ;;  %1369 = vmatprep.mubr.bf16.mxu1 %v866_v59 }
 0x1e5   :  { %1337 = vmatprep.subr.bf16.mxu0 %v1720_v13  ;;  %1355 = vmatprep.subr.bf16.mxu1 %v1722_v16 }
 0x1eb   :  { %1338 = vmatpush3.bf16.xpose.msra.mxu0 %v1725_v17  ;;  %1356 = vmatpush3.bf16.xpose.msra.mxu1 %v1731_v20 }
 0x1ec   :  { %1339 = vmatprep.subr.bf16.mxu0 %v1727_v19  ;;  %1357 = vmatprep.subr.bf16.mxu1 %v1734_v21 }
 0x1f3   :  { %1340 = vmatpush3.bf16.xpose.msra.mxu0 %v1737_v22  ;;  %1358 = vmatpush3.bf16.xpose.msra.mxu1 %v1743_v24 }
 0x1f4   :  { %1341 = vmatprep.subr.bf16.mxu0 %v1740_v23  ;;  %1359 = vmatprep.subr.bf16.mxu1 %v1746_v25 }
 0x1fb   :  { %1342 = vmatpush3.bf16.xpose.msra.mxu0 %v1749_v26  ;;  %1360 = vmatpush3.bf16.xpose.msra.mxu1 %v1755_v28 }
 0x1fc   :  { %1343 = vmatprep.subr.bf16.mxu0 %v1752_v27  ;;  %1361 = vmatprep.subr.bf16.mxu1 %v1758_v30 }
 0x203   :  { %1344 = vmatpush3.bf16.xpose.msra.mxu0 %v1761_v31  ;;  %1362 = vmatpush3.bf16.xpose.msra.mxu1 %v1767_v4 }
 0x204   :  { %1345 = vmatprep.subr.bf16.mxu0 %v1764_v32  ;;  %1363 = vmatprep.subr.bf16.mxu1 %v1904_v60 }
 0x20b   :  { %1346 = vmatpush3.bf16.xpose.msra.mxu0 %v1905_v61  ;;  %1364 = vmatpush3.bf16.xpose.msra.mxu1 %v1779_v10 }
 0x20c   :  { %1347 = vmatprep.subr.bf16.mxu0 %v1906_v62  ;;  %1365 = vmatprep.subr.bf16.mxu1 %v1782_v11 }
 0x213   :  { %1348 = vmatpush3.bf16.xpose.msra.mxu0 %v1907_v63  ;;  %1366 = vmatpush3.bf16.xpose.msra.mxu1 %v1791_v18 }
 0x214   :  { %1349 = vmatprep.subr.bf16.mxu0 %v1788_v15  ;;  %1367 = vmatprep.subr.bf16.mxu1 %v1794_v8 }
 0x21b   :  { %1350 = vmatpush3.bf16.xpose.msra.mxu0 %v1797_v7  ;;  %1368 = vmatpush3.bf16.xpose.msra.mxu1 %v1801_v34 }
 0x222   :  { %1352 = vmatmul.mubr.bf16.vlgmr.msra.gmra.mxu0 %v866_v59  ;;  %1370 = vmatmul.mubr.bf16.vlgmr.msra.gmra.mxu1 %v866_v59 }
 0x2a2   :  { %v901_v0 = vpop.f32.mrf.mxu0  ;;  %v942_v1 = vpop.f32.mrf.mxu1 }
 0x2a3   :  { %v1031_v12 = vmul.f32 0.03125, %v901_v0  ;;  %v1033_v17 = vmul.f32 0.03125, %v942_v1 }
 0x2a4   :  { %v903_v2 = vpop.f32.mrf.mxu0  ;;  %v944_v3 = vpop.f32.mrf.mxu1 }
 0x2a5   :  { %v1032_v33 = vmul.f32 0.03125, %v903_v2  ;;  %v1039_v16 = vmul.f32 %v1031_v12, %v1031_v12  ;;  %v1041_v20 = vmul.f32 %v1033_v17, %v1033_v17  ;;  %v1034_v21 = vmul.f32 0.03125, %v944_v3  ;;  %v1908_v3 = vld [vmem:[#allocation12_spill] sm:$0xff] }
 0x2a6   :  { %v905_v5 = vpop.f32.mrf.mxu0  ;;  %v946_v9 = vpop.f32.mrf.mxu1 }
 0x2a7   :  { %v1040_v13 = vmul.f32 %v1032_v33, %v1032_v33  ;;  %v1047_v19 = vsel %vm230_vm0, %v1039_v16, 0.0  ;;  %v1050_v23 = vsel %vm230_vm0, %v1041_v20, 0.0  ;;  %v1042_v24 = vmul.f32 %v1034_v21, %v1034_v21 }
 0x2a8   :  { %v906_v29 = vpop.f32.mrf.mxu0  ;;  %v947_v6 = vpop.f32.mrf.mxu1 }
 0x2a9   :  { %v1048_v8 = vsel %vm230_vm0, %v1040_v13, 0.0  ;;  %v1052_v4 = vsel %vm230_vm0, %v1042_v24, 0.0  ;;  %v1071_v29 = vld [vmem:[#allocation2] sm:$0xff] }
 0x2aa   :  { %v1049_v22 = vadd.f32 %v1048_v8, %v1047_v19 }
 0x2ac   :  { %v1051_v25 = vadd.f32 %v1050_v23, %v1049_v22 }
 0x2ae   :  { %v1053_v10 = vadd.f32 %v1052_v4, %v1051_v25 }
 0x2e2   :  { %v983_v26 = vpop.f32.mrf.mxu0  ;;  %v1024_v27 = vpop.f32.mrf.mxu1 }
 0x2e3   :  { %v1035_v28 = vmul.f32 0.03125, %v983_v26  ;;  %v1037_v30 = vmul.f32 0.03125, %v1024_v27 }
 0x2e4   :  { %v985_v31 = vpop.f32.mrf.mxu0  ;;  %v1026_v32 = vpop.f32.mrf.mxu1 }
 0x2e5   :  { %v1043_v7 = vmul.f32 %v1035_v28, %v1035_v28  ;;  %v1036_v34 = vmul.f32 0.03125, %v985_v31  ;;  %v1038_v35 = vmul.f32 0.03125, %v1026_v32  ;;  %v1045_v18 = vmul.f32 %v1037_v30, %v1037_v30 }
 0x2e6   :  { %v987_v11 = vpop.f32.mrf.mxu0  ;;  %v1028_v14 = vpop.f32.mrf.mxu1 }
 0x2e7   :  { %v1054_v15 = vsel %vm230_vm0, %v1043_v7, 0.0  ;;  %v1044_v36 = vmul.f32 %v1036_v34, %v1036_v34  ;;  %v1046_v41 = vmul.f32 %v1038_v35, %v1038_v35  ;;  %v1058_v43 = vsel %vm230_vm0, %v1045_v18, 0.0 }
 0x2e8   :  { %v1055_v37 = vadd.f32 %v1054_v15, %v1053_v10  ;;  %v988_v38 = vpop.f32.mrf.mxu0  ;;  %v1029_v39 = vpop.f32.mrf.mxu1 }
 0x2e9   :  { %v1056_v40 = vsel %vm230_vm0, %v1044_v36, 0.0  ;;  %v1060_v45 = vsel %vm230_vm0, %v1046_v41, 0.0 }
 0x2ea   :  { %v1057_v42 = vadd.f32 %v1056_v40, %v1055_v37 }
 0x2ec   :  { %v1059_v44 = vadd.f32 %v1058_v43, %v1057_v42 }
 0x2ee   :  { %v1061_v46 = vadd.f32 %v1060_v45, %v1059_v44 }
 0x2f0   :  { %1062 = vadd.xlane.f32.xlu0 %v1061_v46 }
 0x379   :  { %v1063_v47 = vpop.xlane.xlu0 %1062 }
 0x37a   :  { %1447 = vrsqrt.f32 %v1063_v47  ;;  %vm1066_vm3 = vcmp.eq.f32.partialorder %v1063_v47, inf  ;;  %v1069_v50 = vand.u32 2147483648, %v1063_v47  ;;  %vm1068_vm4 = vcmp.eq.f32.partialorder %v1063_v47, 0.0 }
 0x387   :  { %v1448_v48 = vpop.eup %1447 }
 0x388   :  { %v1065_v49 = vmul.f32 %v1448_v48, %v1063_v47 }
 0x38a   :  { %v1067_v51 = vsel %vm1066_vm3, %v1063_v47, %v1065_v49 }
 0x38b   :  { %v1070_v52 = vsel %vm1068_vm4, %v1069_v50, %v1067_v51 }
 0x38c   :  { %v1073_v53 = vadd.f32 1e-08, %v1070_v52 }
 0x38e   :  { %1449 = vrcp.f32 %v1073_v53 }
 0x39b   :  { %v1450_v54 = vpop.eup %1449 }
 0x39c   :  { %v1075_v55 = vmul.f32 %v1450_v54, %v1031_v12  ;;  %v1076_v56 = vmul.f32 %v1450_v54, %v1032_v33  ;;  %v1077_v57 = vmul.f32 %v1450_v54, %v1033_v17  ;;  %v1078_v58 = vmul.f32 %v1450_v54, %v1034_v21  ;;  %v1072_v33 = vld [vmem:[#allocation2 + $0x8] sm:$0xff] }
 0x39d   :  { %v1079_v59 = vmul.f32 %v1450_v54, %v1035_v28  ;;  %v1080_v60 = vmul.f32 %v1450_v54, %v1036_v34  ;;  %v1081_v61 = vmul.f32 %v1450_v54, %v1037_v30  ;;  %v1082_v62 = vmul.f32 %v1450_v54, %v1038_v35 }
 0x39e   :  { %v1091_v63 = vcombine.low %v1075_v55, %v1076_v56  ;;  %v1092_v0 = vcombine.low %v1077_v57, %v1078_v58 }
 0x39f   :  { %v1108_v1 = vcombine.low %v1079_v59, %v1080_v60  ;;  %v1109_v2 = vcombine.low %v1081_v61, %v1082_v62 }
 0x3a0   :  { %v1099_v5 = vrot.slane %v1091_v63, %v1908_v3  ;;  %v1106_v9 = vrot.slane %v1092_v0, %v1908_v3 }
 0x3a1   :  { %v1116_v6 = vrot.slane %v1108_v1, %v1908_v3  ;;  %v1123_v12 = vrot.slane %v1109_v2, %v1908_v3 }
 0x3a2   :  { %v1107_v13 = vcombine.low %v1099_v5, %v1106_v9 }
 0x3a3   :  { %v1124_v16 = vcombine.low %v1116_v6, %v1123_v12 }
 0x3a4   :  { %v1127_v17 = vadd.f32 %v1107_v13, %v1071_v29 }
 0x3a5   :  { %v1128_v8 = vadd.f32 %v1124_v16, %v1072_v33 }
 0x3a6   :  { %1129 = vst [vmem:[#allocation8] sm:$0xff] %v1127_v17 }
 0x3a7   :  { %1130 = vst [vmem:[#allocation8 + $0x8] sm:$0xff] %v1128_v8 }
 0x3a8   :  { %1522 = shalt.err (!%p1519_p5)
}
 0x3a9   :  { %1140 = dma.vmem_to_hbm [thread:$0]  %s1138_s2, 256, %s1892_s3, [#allocation4]  }
 0x3aa   :  { %1535 = dma.done.wait [#allocation4], 256  }
 0x3ab   :  { %1536 = vsyncadd [#allocation4], 4294967040 }
 0x3ac   :  { %1144 = vsyncpa [#allocation3], 1 }
 0x3ad   :  { %1145 = vsyncpa [#allocation6], 1 }
 0x3ae   :  { %1146 = vsyncpa [#allocation4], 1 }

// kernel: tpu_custom_call.1
= control target key start
LH: loop header
LB: loop body
LE: loop exit
PB: predicated region body
PF: predicated region fallthrough
CT: control target
= control target key end

     0   :  { %8 = vsyncpa [#allocation3], 0  ;;  %s1889_s0 = inlined_call_operand.hbm [shape: f32[2,1024], index: 0, kind: input, shape index: {}]   ;;  %s1890_s1 = inlined_call_operand.hbm [shape: bf16[2,1024], index: 1, kind: input, shape index: {}]   ;;  %s1891_s2 = inlined_call_operand.hbm [shape: bf16[1024,128], index: 2, kind: input, shape index: {}]   ;;  %s1892_s3 = inlined_call_operand.hbm [shape: f32[2,1024], index: 3, kind: output, shape index: {}]  }
   0x1   :  { %9 = vsyncpa [#allocation6], 0 }
   0x2   :  { %10 = vsyncpa [#allocation4], 0  ;;  %s1537_s12 = smov [#allocation5]   ;;  %s1538_s14 = smov [#allocation2]  }
   0x3   :  { %s27_s13 = sshll.u32 %s1537_s12, 4  ;;  %s17_s15 = sshll.u32 %s1538_s14, 4  ;;  %s28_s13 = int_to_ptr.vmem [resolvable:$true] %s27_s13  ;;  %s18_s15 = int_to_ptr.vmem [resolvable:$true] %s17_s15 }
   0x4   :  { %s1459_s16 = scalar_lea.vmem %s28_s13, 128  ;;  %p1464_p1 = scmp.lt.s32.totalorder %s28_s13, %s28_s13 }
   0x5   :  { %p1460_p0 = scmp.ne.s32.totalorder %s28_s13, %s1459_s16  ;;  %p1465_p2 = scmp.lt.s32.totalorder %s1459_s16, %s1459_s16 }
   0x7   :  { %p1466_p3 = por %p1465_p2, %p1464_p1 }
   0x9   :  { %p1467_p4 = pnand %p1466_p3, %p1460_p0 }
   0xb   :  { %1470 = shalt.err (!%p1467_p4)
}
   0xc   :  { %30 = dma.hbm_to_vmem [thread:$0]  %s1890_s1, 128, %s28_s13, [#allocation6]  }
   0xd   :  { %s1479_s19 = scalar_lea.vmem %s18_s15, 256  ;;  %p1484_p6 = scmp.lt.s32.totalorder %s18_s15, %s18_s15 }
   0xe   :  { %p1480_p5 = scmp.ne.s32.totalorder %s18_s15, %s1479_s19  ;;  %p1485_p7 = scmp.lt.s32.totalorder %s1479_s19, %s1479_s19 }
  0x10   :  { %p1486_p8 = por %p1485_p7, %p1484_p6 }
  0x12   :  { %p1487_p9 = pnand %p1486_p8, %p1480_p5 }
  0x14   :  { %1490 = shalt.err (!%p1487_p9)
}
  0x15   :  { %20 = dma.hbm_to_vmem [thread:$0]  %s1889_s0, 256, %s18_s15, [#allocation3]  }
  0x16   :  { %s1539_s22 = smov [#allocation7]  }
  0x17   :  { %s36_s23 = sshll.u32 %s1539_s22, 4  ;;  %s37_s23 = int_to_ptr.vmem [resolvable:$true] %s36_s23 }
  0x18   :  { %s1499_s24 = scalar_lea.vmem %s37_s23, 8192  ;;  %p1504_p11 = scmp.lt.s32.totalorder %s37_s23, %s37_s23 }
  0x19   :  { %p1500_p10 = scmp.ne.s32.totalorder %s37_s23, %s1499_s24  ;;  %p1505_p12 = scmp.lt.s32.totalorder %s1499_s24, %s1499_s24 }
  0x1b   :  { %p1506_p13 = por %p1505_p12, %p1504_p11 }
  0x1d   :  { %p1507_p0 = pnand %p1506_p13, %p1500_p10 }
  0x1f   :  { %1510 = shalt.err (!%p1507_p0)
}
  0x20   :  { %s1540_s1 = smov 64   ;;  %s1541_s25 = smov 4  }
  0x21   :  { %42 = dma.hbm_to_vmem [thread:$0]  %s1891_s2, 8192, %s37_s23, [#allocation6], %s1540_s1, %s1540_s1, %s1541_s25  }
  0x22   :  { %1531 = dma.done.wait [#allocation3], 256  }
  0x23   :  { %1532 = vsyncadd [#allocation3], 4294967040 }
  0x24   :  { %1533 = dma.done.wait [#allocation6], 8320  }
  0x25   :  { %1534 = vsyncadd [#allocation6], 4294958976  ;;  %v192_v0 = vlaneseq  ;;  %v1542_v1 = vmov 1983009808   ;;  %v181_v5 = vld [vmem:[#allocation5] sm:$0xff]  ;;  %vm230_vm0 = vcmask 1041408  }
  0x26   :  { %v190_v2 = vunpack.c.l.s4 %v1542_v1  ;;  %v1576_v6 = vunpack.c.l.bf16 %v181_v5  ;;  %v1578_v7 = vunpack.c.h.bf16 %v181_v5  ;;  %v1599_v36 = vld [vmem:[#allocation7 + $0x78] sm:$0xff]   ;;  %v1610_v40 = vld [vmem:[#allocation7 + $0x70] sm:$0xff]   ;;  %v1622_v44 = vld [vmem:[#allocation7 + $0x68] sm:$0xff]   ;;  %s1544_s0 = smov [#allocation8]  }
  0x27   :  { %v1574_v4 = vshrl.u32 %v192_v0, 7  ;;  %v1601_v37 = vld [vmem:[#allocation7 + $0x38] sm:$0xff]   ;;  %1211 = vmatprep.subr.bf16.mxu0 %v1599_v36  ;;  %v1613_v41 = vld [vmem:[#allocation7 + $0x30] sm:$0xff]   ;;  %v1625_v45 = vld [vmem:[#allocation7 + $0x28] sm:$0xff]   ;;  %s1137_s2 = sshll.u32 %s1544_s0, 4  ;;  %s1138_s2 = int_to_ptr.vmem [resolvable:$true] %s1137_s2 }
  0x28   :  { %v191_v3 = vunpack.c.0.s8 %v190_v2  ;;  %v184_v9 = vmul.f32 %v1576_v6, %v1576_v6  ;;  %v185_v10 = vmul.f32 %v1578_v7, %v1578_v7  ;;  %v1604_v38 = vld [vmem:[#allocation7 + $0xf8] sm:$0xff]   ;;  %1212 = vmatpush3.bf16.msra.mxu0 %v1601_v37  ;;  %v1616_v42 = vld [vmem:[#allocation7 + $0xf0] sm:$0xff]   ;;  %v1628_v46 = vld [vmem:[#allocation7 + $0xe8] sm:$0xff]   ;;  %s1511_s28 = scalar_lea.vmem %s1138_s2, 256  ;;  %p1516_p2 = scmp.lt.s32.totalorder %s1138_s2, %s1138_s2 }
  0x29   :  { %v1607_v39 = vld [vmem:[#allocation7 + $0xb8] sm:$0xff]   ;;  %1233 = vmatprep.subr.bf16.mxu1 %v1604_v38  ;;  %1213 = vmatprep.subr.bf16.mxu0 %v1610_v40  ;;  %v1619_v43 = vld [vmem:[#allocation7 + $0xb0] sm:$0xff]   ;;  %v1630_v47 = vld [vmem:[#allocation7 + $0xa8] sm:$0xff]   ;;  %p1512_p1 = scmp.ne.s32.totalorder %s1138_s2, %s1511_s28  ;;  %p1517_p3 = scmp.lt.s32.totalorder %s1511_s28, %s1511_s28 }
  0x2a   :  { %v1581_v8 = vsub.s32 %v191_v3, %v1574_v4  ;;  %v188_v11 = vcombine.high %v184_v9, %v184_v9  ;;  %v205_v13 = vcombine.high %v185_v10, %v185_v10  ;;  %1234 = vmatpush3.bf16.msra.mxu1 %v1607_v39  ;;  %v1632_v48 = vld [vmem:[#allocation7 + $0x60] sm:$0xff]   ;;  %v1641_v51 = vld [vmem:[#allocation7 + $0x58] sm:$0xff]   ;;  %v1653_v55 = vld [vmem:[#allocation7 + $0x50] sm:$0xff]  }
  0x2b   :  { %1235 = vmatprep.subr.bf16.mxu1 %v1616_v42  ;;  %v1635_v49 = vld [vmem:[#allocation7 + $0x20] sm:$0xff]   ;;  %v1647_v53 = vld [vmem:[#allocation7 + $0xd8] sm:$0xff]   ;;  %v1659_v57 = vld [vmem:[#allocation7 + $0xd0] sm:$0xff]   ;;  %p1518_p4 = por %p1517_p3, %p1516_p2 }
  0x2c   :  { %1899 = vst [vmem:[#allocation12_spill] sm:$0xff] %v1581_v8  ;;  %v195_v12 = vrot.slane %v184_v9, %v1581_v8  ;;  %v212_v14 = vrot.slane %v185_v10, %v1581_v8  ;;  %v202_v15 = vrot.slane %v188_v11, %v1581_v8  ;;  %v219_v17 = vrot.slane %v205_v13, %v1581_v8  ;;  %v1637_v50 = vld [vmem:[#allocation7 + $0xe0] sm:$0xff]   ;;  %v1650_v54 = vld [vmem:[#allocation7 + $0x18] sm:$0xff]   ;;  %v1662_v58 = vld [vmem:[#allocation7 + $0x10] sm:$0xff]  }
  0x2d   :  { %1214 = vmatpush3.bf16.msra.mxu0 %v1613_v41  ;;  %v1644_v52 = vld [vmem:[#allocation7 + $0xa0] sm:$0xff]   ;;  %v1656_v56 = vld [vmem:[#allocation7 + $0x98] sm:$0xff]   ;;  %v1665_v59 = vld [vmem:[#allocation7 + $0x48] sm:$0xff]   ;;  %p1519_p5 = pnand %p1518_p4, %p1512_p1 }
  0x2e   :  { %v203_v16 = vcombine.high %v195_v12, %v195_v12  ;;  %v220_v18 = vcombine.high %v212_v14, %v212_v14  ;;  %v231_v19 = vsel %vm230_vm0, %v195_v12, 0.0  ;;  %v238_v20 = vsel %vm230_vm0, %v212_v14, 0.0  ;;  %1236 = vmatpush3.bf16.msra.mxu1 %v1619_v43  ;;  %1215 = vmatprep.subr.bf16.mxu0 %v1622_v44  ;;  %v1668_v60 = vld [vmem:[#allocation7 + $0x90] sm:$0xff]   ;;  %v1671_v61 = vld [vmem:[#allocation7 + $0xc8] sm:$0xff]   ;;  %v1677_v63 = vld [vmem:[#allocation7 + $0x40] sm:$0xff]  }
  0x2f   :  { %v204_v21 = vcombine.high %v202_v15, %v202_v15  ;;  %v221_v22 = vcombine.high %v219_v17, %v219_v17  ;;  %v234_v24 = vsel %vm230_vm0, %v202_v15, 0.0  ;;  %v242_v27 = vsel %vm230_vm0, %v219_v17, 0.0  ;;  %1237 = vmatprep.subr.bf16.mxu1 %v1628_v46  ;;  %v1674_v62 = vld [vmem:[#allocation7 + $0x8] sm:$0xff]   ;;  %v1683_v1 = vld [vmem:[#allocation7 + $0xc0] sm:$0xff]   ;;  %v1694_v5 = vld [vmem:[#allocation7 + $0x178] sm:$0xff]  }
  0x30   :  { %v232_v23 = vsel %vm230_vm0, %v203_v16, 0.0  ;;  %v240_v26 = vsel %vm230_vm0, %v220_v18, 0.0  ;;  %v1680_v0 = vld [vmem:[#allocation7 + $0x88] sm:$0xff]   ;;  %v1686_v2 = vld [vmem:[#allocation7] sm:$0xff]   ;;  %v1698_v9 = vld [vmem:[#allocation7 + $0x1f8] sm:$0xff]  }
  0x31   :  { %v233_v25 = vadd.f32 %v232_v23, %v231_v19  ;;  %v236_v28 = vsel %vm230_vm0, %v204_v21, 0.0  ;;  %v244_v29 = vsel %vm230_vm0, %v221_v22, 0.0  ;;  %1216 = vmatpush3.bf16.msra.mxu0 %v1625_v45  ;;  %v1690_v3 = vld [vmem:[#allocation7 + $0x80] sm:$0xff]   ;;  %v1543_v17 = vmov 269488144  }
  0x32   :  { %1217 = vmatprep.subr.bf16.mxu0 %v1632_v48  ;;  %1238 = vmatpush3.bf16.msra.mxu1 %v1630_v47  ;;  %v261_v18 = vunpack.c.l.s4 %v1543_v17  ;;  %v255_v21 = vmul.f32 0.01, %v1576_v6  ;;  %v256_v22 = vmul.f32 0.01, %v1578_v7  ;;  %v1725_v17 = vld [vmem:[#allocation7 + $0x130] sm:$0xff]  }
  0x33   :  { %v235_v30 = vadd.f32 %v234_v24, %v233_v25  ;;  %1239 = vmatprep.subr.bf16.mxu1 %v1637_v50 }
  0x34   :  { %v262_v19 = vunpack.c.0.s8 %v261_v18 }
  0x35   :  { %v237_v31 = vadd.f32 %v236_v28, %v235_v30  ;;  %1218 = vmatpush3.bf16.msra.mxu0 %v1635_v49 }
  0x36   :  { %1219 = vmatprep.subr.bf16.mxu0 %v1641_v51  ;;  %1240 = vmatpush3.bf16.msra.mxu1 %v1644_v52 }
  0x37   :  { %v239_v32 = vadd.f32 %v238_v20, %v237_v31  ;;  %1241 = vmatprep.subr.bf16.mxu1 %v1647_v53  ;;  %v265_v20 = vsub.s32 %v262_v19, %v1574_v4  ;;  %v1727_v19 = vld [vmem:[#allocation7 + $0x168] sm:$0xff]  }
  0x39   :  { %v241_v33 = vadd.f32 %v240_v26, %v239_v32  ;;  %1220 = vmatpush3.bf16.msra.mxu0 %v1650_v54 }
  0x3a   :  { %1221 = vmatprep.subr.bf16.mxu0 %v1653_v55  ;;  %1242 = vmatpush3.bf16.msra.mxu1 %v1656_v56 }
  0x3b   :  { %v243_v34 = vadd.f32 %v242_v27, %v241_v33  ;;  %1243 = vmatprep.subr.bf16.mxu1 %v1659_v57  ;;  %v1714_v33 = vld [vmem:[#allocation7 + $0x138] sm:$0xff]  }
  0x3d   :  { %v245_v35 = vadd.f32 %v244_v29, %v243_v34  ;;  %1222 = vmatpush3.bf16.msra.mxu0 %v1662_v58 }
  0x3e   :  { %1223 = vmatprep.subr.bf16.mxu0 %v1665_v59  ;;  %1244 = vmatpush3.bf16.msra.mxu1 %v1668_v60 }
  0x3f   :  { %246 = vadd.xlane.f32.xlu0 %v245_v35  ;;  %1245 = vmatprep.subr.bf16.mxu1 %v1671_v61 }
  0x41   :  { %1224 = vmatpush3.bf16.msra.mxu0 %v1674_v62 }
  0x42   :  { %1225 = vmatprep.subr.bf16.mxu0 %v1677_v63  ;;  %1246 = vmatpush3.bf16.msra.mxu1 %v1680_v0 }
  0x43   :  { %1247 = vmatprep.subr.bf16.mxu1 %v1683_v1 }
  0x45   :  { %1226 = vmatpush3.bf16.msra.mxu0 %v1686_v2 }
  0x46   :  { %1248 = vmatpush3.bf16.msra.mxu1 %v1690_v3  ;;  %1255 = vmatprep.subr.bf16.mxu0 %v1694_v5 }
  0x47   :  { %1277 = vmatprep.subr.bf16.mxu1 %v1698_v9 }
  0xc8   :  { %v247_v10 = vpop.xlane.xlu0 %246 }
  0xc9   :  { %1443 = vrsqrt.f32 %v247_v10  ;;  %vm250_vm1 = vcmp.eq.f32.partialorder %v247_v10, inf  ;;  %v253_v13 = vand.u32 2147483648, %v247_v10  ;;  %vm252_vm2 = vcmp.eq.f32.partialorder %v247_v10, 0.0 }
  0xd6   :  { %v1444_v11 = vpop.eup %1443 }
  0xd7   :  { %v249_v12 = vmul.f32 %v1444_v11, %v247_v10 }
  0xd9   :  { %v251_v14 = vsel %vm250_vm1, %v247_v10, %v249_v12  ;;  %v1718_v12 = vld [vmem:[#allocation7 + $0x1b8] sm:$0xff]  }
  0xda   :  { %v254_v15 = vsel %vm252_vm2, %v253_v13, %v251_v14  ;;  %v1720_v13 = vld [vmem:[#allocation7 + $0x170] sm:$0xff]  }
  0xdb   :  { %v257_v16 = vadd.f32 1e-08, %v254_v15 }
  0xdd   :  { %1445 = vrcp.f32 %v257_v16  ;;  %v1722_v16 = vld [vmem:[#allocation7 + $0x1f0] sm:$0xff]  }
  0xea   :  { %v1446_v23 = vpop.eup %1445 }
  0xeb   :  { %v266_v24 = vrot.slane %v1446_v23, %v265_v20  ;;  %v1731_v20 = vld [vmem:[#allocation7 + $0x1b0] sm:$0xff]   ;;  %v1740_v23 = vld [vmem:[#allocation7 + $0x160] sm:$0xff]  }
  0xed   :  { %v268_v25 = vmul.f32 %v266_v24, %v255_v21  ;;  %v269_v26 = vmul.f32 %v266_v24, %v256_v22  ;;  %v1734_v21 = vld [vmem:[#allocation7 + $0x1e8] sm:$0xff]  }
  0xee   :  { %v1737_v22 = vld [vmem:[#allocation7 + $0x128] sm:$0xff]  }
  0xef   :  { %v279_v27 = vrot.slane %v268_v25, %v1581_v8  ;;  %v272_v28 = vcombine.high %v268_v25, %v268_v25  ;;  %v1706_v29 = vrot.slane %v269_v26, %v1581_v8  ;;  %v289_v30 = vcombine.high %v269_v26, %v269_v26  ;;  %v1743_v24 = vld [vmem:[#allocation7 + $0x1a8] sm:$0xff]   ;;  %v1746_v25 = vld [vmem:[#allocation7 + $0x1e0] sm:$0xff]  }
  0xf0   :  { %v1749_v26 = vld [vmem:[#allocation7 + $0x120] sm:$0xff]  }
  0xf1   :  { %v287_v31 = vcombine.high %v279_v27, %v279_v27  ;;  %v286_v32 = vrot.slane %v272_v28, %v1581_v8  ;;  %v304_v4 = vcombine.high %v1706_v29, %v1706_v29  ;;  %v1712_v6 = vrot.slane %v289_v30, %v1581_v8  ;;  %v1755_v28 = vld [vmem:[#allocation7 + $0x1a0] sm:$0xff]   ;;  %v1758_v30 = vld [vmem:[#allocation7 + $0x1d8] sm:$0xff]  }
  0xf2   :  { %v314_v35 = vpack.c.bf16 %v279_v27, %v279_v27  ;;  %v1752_v27 = vld [vmem:[#allocation7 + $0x158] sm:$0xff]   ;;  %v1794_v8 = vld [vmem:[#allocation7 + $0x1c0] sm:$0xff]  }
  0xf3   :  { %v315_v7 = vpack.c.bf16 %v287_v31, %v287_v31  ;;  %v288_v34 = vcombine.high %v286_v32, %v286_v32  ;;  %v305_v10 = vcombine.high %v1712_v6, %v1712_v6  ;;  %v319_v14 = vpack.c.bf16 %v304_v4, %v304_v4  ;;  %v1761_v31 = vld [vmem:[#allocation7 + $0x118] sm:$0xff]  }
  0xf4   :  { %v316_v15 = vpack.c.bf16 %v286_v32, %v286_v32  ;;  %v1764_v32 = vld [vmem:[#allocation7 + $0x150] sm:$0xff]   ;;  %v1767_v4 = vld [vmem:[#allocation7 + $0x198] sm:$0xff]  }
  0xf5   :  { %738 = vmatprep.mubr.bf16.mxu0 %v315_v7  ;;  %v317_v11 = vpack.c.bf16 %v288_v34, %v288_v34  ;;  %v321_v18 = vpack.c.bf16 %v305_v10, %v305_v10  ;;  %v1770_v7 = vld [vmem:[#allocation7 + $0x1d0] sm:$0xff]  }
  0xf6   :  { %739 = vmatmul.mubr.bf16.vlgmr.msra.gmra.mxu0 %v314_v35  ;;  %1900 = vst [vmem:[#allocation13_spill] sm:$0xff] %v1770_v7  ;;  %v1773_v34 = vld [vmem:[#allocation7 + $0x110] sm:$0xff]   ;;  %v1776_v35 = vld [vmem:[#allocation7 + $0x148] sm:$0xff]  }
  0xf7   :  { %1256 = vmatpush3.bf16.msra.mxu0 %v1714_v33  ;;  %778 = vmatprep.mubr.bf16.mxu1 %v317_v11  ;;  %1901 = vst [vmem:[#allocation14_spill] sm:$0xff] %v1773_v34  ;;  %1902 = vst [vmem:[#allocation15_spill] sm:$0xff] %v1776_v35  ;;  %v1779_v10 = vld [vmem:[#allocation7 + $0x190] sm:$0xff]   ;;  %v1782_v11 = vld [vmem:[#allocation7 + $0x1c8] sm:$0xff]  }
  0xf8   :  { %818 = vmatprep.mubr.bf16.mxu0 %v319_v14  ;;  %779 = vmatmul.mubr.bf16.vlgmr.msra.gmra.mxu1 %v316_v15  ;;  %v1785_v14 = vld [vmem:[#allocation7 + $0x108] sm:$0xff]   ;;  %v1788_v15 = vld [vmem:[#allocation7 + $0x140] sm:$0xff]  }
  0xf9   :  { %1278 = vmatpush3.bf16.msra.mxu1 %v1718_v12  ;;  %1257 = vmatprep.subr.bf16.mxu0 %v1720_v13  ;;  %1903 = vst [vmem:[#allocation16_spill] sm:$0xff] %v1785_v14 }
  0xfa   :  { %858 = vmatprep.mubr.bf16.mxu1 %v321_v18  ;;  %1279 = vmatprep.subr.bf16.mxu1 %v1722_v16  ;;  %v1791_v18 = vld [vmem:[#allocation7 + $0x188] sm:$0xff]  }
  0xfb   :  { %1258 = vmatpush3.bf16.msra.mxu0 %v1725_v17 }
  0xfc   :  { %1259 = vmatprep.subr.bf16.mxu0 %v1727_v19 }
  0xfd   :  { %1280 = vmatpush3.bf16.msra.mxu1 %v1731_v20 }
  0xfe   :  { %1281 = vmatprep.subr.bf16.mxu1 %v1734_v21 }
  0xff   :  { %1260 = vmatpush3.bf16.msra.mxu0 %v1737_v22 }
 0x100   :  { %1261 = vmatprep.subr.bf16.mxu0 %v1740_v23 }
 0x101   :  { %1282 = vmatpush3.bf16.msra.mxu1 %v1743_v24 }
 0x102   :  { %1283 = vmatprep.subr.bf16.mxu1 %v1746_v25 }
 0x103   :  { %1262 = vmatpush3.bf16.msra.mxu0 %v1749_v26 }
 0x104   :  { %1263 = vmatprep.subr.bf16.mxu0 %v1752_v27 }
 0x105   :  { %1284 = vmatpush3.bf16.msra.mxu1 %v1755_v28 }
 0x106   :  { %1285 = vmatprep.subr.bf16.mxu1 %v1758_v30 }
 0x107   :  { %1264 = vmatpush3.bf16.msra.mxu0 %v1761_v31 }
 0x108   :  { %1265 = vmatprep.subr.bf16.mxu0 %v1764_v32 }
 0x109   :  { %1286 = vmatpush3.bf16.msra.mxu1 %v1767_v4 }
 0x10a   :  { %1287 = vmatprep.subr.bf16.mxu1 %v1770_v7  ;;  %v1797_v7 = vld [vmem:[#allocation7 + $0x100] sm:$0xff]  }
 0x10b   :  { %1266 = vmatpush3.bf16.msra.mxu0 %v1773_v34  ;;  %v1801_v34 = vld [vmem:[#allocation7 + $0x180] sm:$0xff]  }
 0x10c   :  { %1267 = vmatprep.subr.bf16.mxu0 %v1776_v35  ;;  %v318_v35 = vpack.c.bf16 %v1706_v29, %v1706_v29 }
 0x10d   :  { %1288 = vmatpush3.bf16.msra.mxu1 %v1779_v10 }
 0x10e   :  { %1289 = vmatprep.subr.bf16.mxu1 %v1782_v11 }
 0x10f   :  { %1268 = vmatpush3.bf16.msra.mxu0 %v1785_v14  ;;  %v320_v14 = vpack.c.bf16 %v1712_v6, %v1712_v6 }
 0x110   :  { %1269 = vmatprep.subr.bf16.mxu0 %v1788_v15 }
 0x111   :  { %1290 = vmatpush3.bf16.msra.mxu1 %v1791_v18 }
 0x112   :  { %1291 = vmatprep.subr.bf16.mxu1 %v1794_v8 }
 0x113   :  { %1270 = vmatpush3.bf16.msra.mxu0 %v1797_v7 }
 0x114   :  { %1299 = vmatprep.subr.bf16.mxu0 %v1599_v36 }
 0x115   :  { %1292 = vmatpush3.bf16.msra.mxu1 %v1801_v34 }
 0x116   :  { %819 = vmatmul.mubr.bf16.vlgmr.msra.gmra.mxu0 %v318_v35  ;;  %1317 = vmatprep.subr.bf16.mxu1 %v1604_v38 }
 0x117   :  { %1300 = vmatpush3.bf16.xpose.msra.mxu0 %v1601_v37 }
 0x118   :  { %859 = vmatmul.mubr.bf16.vlgmr.msra.gmra.mxu1 %v320_v14  ;;  %1301 = vmatprep.subr.bf16.mxu0 %v1610_v40 }
 0x119   :  { %1318 = vmatpush3.bf16.xpose.msra.mxu1 %v1607_v39 }
 0x11a   :  { %1319 = vmatprep.subr.bf16.mxu1 %v1616_v42 }
 0x11f   :  { %1302 = vmatpush3.bf16.xpose.msra.mxu0 %v1613_v41 }
 0x120   :  { %1303 = vmatprep.subr.bf16.mxu0 %v1622_v44 }
 0x121   :  { %1320 = vmatpush3.bf16.xpose.msra.mxu1 %v1619_v43 }
 0x122   :  { %1321 = vmatprep.subr.bf16.mxu1 %v1628_v46 }
 0x127   :  { %1304 = vmatpush3.bf16.xpose.msra.mxu0 %v1625_v45 }
 0x128   :  { %1305 = vmatprep.subr.bf16.mxu0 %v1632_v48 }
 0x129   :  { %1322 = vmatpush3.bf16.xpose.msra.mxu1 %v1630_v47 }
 0x12a   :  { %1323 = vmatprep.subr.bf16.mxu1 %v1637_v50 }
 0x12f   :  { %1306 = vmatpush3.bf16.xpose.msra.mxu0 %v1635_v49 }
 0x130   :  { %1307 = vmatprep.subr.bf16.mxu0 %v1641_v51 }
 0x131   :  { %1324 = vmatpush3.bf16.xpose.msra.mxu1 %v1644_v52 }
 0x132   :  { %1325 = vmatprep.subr.bf16.mxu1 %v1647_v53 }
 0x137   :  { %1308 = vmatpush3.bf16.xpose.msra.mxu0 %v1650_v54 }
 0x138   :  { %1309 = vmatprep.subr.bf16.mxu0 %v1653_v55 }
 0x139   :  { %1326 = vmatpush3.bf16.xpose.msra.mxu1 %v1656_v56 }
 0x13a   :  { %1327 = vmatprep.subr.bf16.mxu1 %v1659_v57 }
 0x13f   :  { %1310 = vmatpush3.bf16.xpose.msra.mxu0 %v1662_v58 }
 0x140   :  { %1311 = vmatprep.subr.bf16.mxu0 %v1665_v59 }
 0x141   :  { %1328 = vmatpush3.bf16.xpose.msra.mxu1 %v1668_v60  ;;  %v1904_v60 = vld [vmem:[#allocation13_spill] sm:$0xff] }
 0x142   :  { %1329 = vmatprep.subr.bf16.mxu1 %v1671_v61  ;;  %v1905_v61 = vld [vmem:[#allocation14_spill] sm:$0xff] }
 0x147   :  { %1312 = vmatpush3.bf16.xpose.msra.mxu0 %v1674_v62  ;;  %v1906_v62 = vld [vmem:[#allocation15_spill] sm:$0xff] }
 0x148   :  { %1313 = vmatprep.subr.bf16.mxu0 %v1677_v63  ;;  %v1907_v63 = vld [vmem:[#allocation16_spill] sm:$0xff] }
 0x149   :  { %1330 = vmatpush3.bf16.xpose.msra.mxu1 %v1680_v0 }
 0x14a   :  { %1331 = vmatprep.subr.bf16.mxu1 %v1683_v1 }
 0x14f   :  { %1314 = vmatpush3.bf16.xpose.msra.mxu0 %v1686_v2 }
 0x150   :  { %1335 = vmatprep.subr.bf16.mxu0 %v1694_v5 }
 0x151   :  { %1332 = vmatpush3.bf16.xpose.msra.mxu1 %v1690_v3 }
 0x152   :  { %1353 = vmatprep.subr.bf16.mxu1 %v1698_v9 }
 0x1b6   :  { %v1227_v36 = vpop.f32.mrf.mxu0 }
 0x1b8   :  { %v1228_v37 = vpop.f32.mrf.mxu0  ;;  %v1249_v38 = vpop.f32.mrf.mxu1 }
 0x1b9   :  { %v1229_v46 = vadd.f32 %v1228_v37, %v1227_v36 }
 0x1ba   :  { %v1230_v39 = vpop.f32.mrf.mxu0  ;;  %v1250_v40 = vpop.f32.mrf.mxu1 }
 0x1bb   :  { %v1251_v44 = vadd.f32 %v1250_v40, %v1249_v38 }
 0x1bc   :  { %v1231_v41 = vpop.f32.mrf.mxu0  ;;  %v1252_v42 = vpop.f32.mrf.mxu1 }
 0x1bd   :  { %v781_v49 = vadd.f32 %v1251_v44, %v1229_v46 }
 0x1be   :  { %v1253_v43 = vpop.f32.mrf.mxu1 }
 0x1d6   :  { %v1271_v45 = vpop.f32.mrf.mxu0 }
 0x1d8   :  { %v1272_v47 = vpop.f32.mrf.mxu0  ;;  %v1293_v48 = vpop.f32.mrf.mxu1 }
 0x1d9   :  { %v1273_v50 = vadd.f32 %v1272_v47, %v1271_v45 }
 0x1da   :  { %v1274_v51 = vpop.f32.mrf.mxu0  ;;  %v1294_v52 = vpop.f32.mrf.mxu1 }
 0x1db   :  { %v821_v53 = vadd.f32 %v1273_v50, %v781_v49  ;;  %v1295_v54 = vadd.f32 %v1294_v52, %v1293_v48 }
 0x1dc   :  { %v1275_v55 = vpop.f32.mrf.mxu0  ;;  %v1296_v56 = vpop.f32.mrf.mxu1 }
 0x1dd   :  { %v861_v57 = vadd.f32 %v1295_v54, %v821_v53 }
 0x1de   :  { %v1297_v58 = vpop.f32.mrf.mxu1 }
 0x1df   :  { %v866_v59 = vpack.c.bf16 %v861_v57, %v861_v57 }
 0x1e1   :  { %1315 = vmatprep.mubr.bf16.mxu0 %v866_v59  ;;  %1333 = vmatprep.mubr.bf16.mxu1 %v866_v59 }
 0x1e2   :  { %1316 = vmatmul.mubr.bf16.vlgmr.msra.gmra.mxu0 %v866_v59  ;;  %1334 = vmatmul.mubr.bf16.vlgmr.msra.gmra.mxu1 %v866_v59 }
 0x1e3   :  { %1336 = vmatpush3.bf16.xpose.msra.mxu0 %v1714_v33  ;;  %1354 = vmatpush3.bf16.xpose.msra.mxu1 %v1718_v12 }
 0x1e4   :  { %1351 = vmatprep.mubr.bf16.mxu0 %v866_v59  ;;  %1369 = vmatprep.mubr.bf16.mxu1 %v866_v59 }
 0x1e5   :  { %1337 = vmatprep.subr.bf16.mxu0 %v1720_v13  ;;  %1355 = vmatprep.subr.bf16.mxu1 %v1722_v16 }
 0x1eb   :  { %1338 = vmatpush3.bf16.xpose.msra.mxu0 %v1725_v17  ;;  %1356 = vmatpush3.bf16.xpose.msra.mxu1 %v1731_v20 }
 0x1ec   :  { %1339 = vmatprep.subr.bf16.mxu0 %v1727_v19  ;;  %1357 = vmatprep.subr.bf16.mxu1 %v1734_v21 }
 0x1f3   :  { %1340 = vmatpush3.bf16.xpose.msra.mxu0 %v1737_v22  ;;  %1358 = vmatpush3.bf16.xpose.msra.mxu1 %v1743_v24 }
 0x1f4   :  { %1341 = vmatprep.subr.bf16.mxu0 %v1740_v23  ;;  %1359 = vmatprep.subr.bf16.mxu1 %v1746_v25 }
 0x1fb   :  { %1342 = vmatpush3.bf16.xpose.msra.mxu0 %v1749_v26  ;;  %1360 = vmatpush3.bf16.xpose.msra.mxu1 %v1755_v28 }
 0x1fc   :  { %1343 = vmatprep.subr.bf16.mxu0 %v1752_v27  ;;  %1361 = vmatprep.subr.bf16.mxu1 %v1758_v30 }
 0x203   :  { %1344 = vmatpush3.bf16.xpose.msra.mxu0 %v1761_v31  ;;  %1362 = vmatpush3.bf16.xpose.msra.mxu1 %v1767_v4 }
 0x204   :  { %1345 = vmatprep.subr.bf16.mxu0 %v1764_v32  ;;  %1363 = vmatprep.subr.bf16.mxu1 %v1904_v60 }
 0x20b   :  { %1346 = vmatpush3.bf16.xpose.msra.mxu0 %v1905_v61  ;;  %1364 = vmatpush3.bf16.xpose.msra.mxu1 %v1779_v10 }
 0x20c   :  { %1347 = vmatprep.subr.bf16.mxu0 %v1906_v62  ;;  %1365 = vmatprep.subr.bf16.mxu1 %v1782_v11 }
 0x213   :  { %1348 = vmatpush3.bf16.xpose.msra.mxu0 %v1907_v63  ;;  %1366 = vmatpush3.bf16.xpose.msra.mxu1 %v1791_v18 }
 0x214   :  { %1349 = vmatprep.subr.bf16.mxu0 %v1788_v15  ;;  %1367 = vmatprep.subr.bf16.mxu1 %v1794_v8 }
 0x21b   :  { %1350 = vmatpush3.bf16.xpose.msra.mxu0 %v1797_v7  ;;  %1368 = vmatpush3.bf16.xpose.msra.mxu1 %v1801_v34 }
 0x222   :  { %1352 = vmatmul.mubr.bf16.vlgmr.msra.gmra.mxu0 %v866_v59  ;;  %1370 = vmatmul.mubr.bf16.vlgmr.msra.gmra.mxu1 %v866_v59 }
 0x2a2   :  { %v901_v0 = vpop.f32.mrf.mxu0  ;;  %v942_v1 = vpop.f32.mrf.mxu1 }
 0x2a3   :  { %v1031_v12 = vmul.f32 0.03125, %v901_v0  ;;  %v1033_v17 = vmul.f32 0.03125, %v942_v1 }
 0x2a4   :  { %v903_v2 = vpop.f32.mrf.mxu0  ;;  %v944_v3 = vpop.f32.mrf.mxu1 }
 0x2a5   :  { %v1032_v33 = vmul.f32 0.03125, %v903_v2  ;;  %v1039_v16 = vmul.f32 %v1031_v12, %v1031_v12  ;;  %v1041_v20 = vmul.f32 %v1033_v17, %v1033_v17  ;;  %v1034_v21 = vmul.f32 0.03125, %v944_v3  ;;  %v1908_v3 = vld [vmem:[#allocation12_spill] sm:$0xff] }
 0x2a6   :  { %v905_v5 = vpop.f32.mrf.mxu0  ;;  %v946_v9 = vpop.f32.mrf.mxu1 }
 0x2a7   :  { %v1040_v13 = vmul.f32 %v1032_v33, %v1032_v33  ;;  %v1047_v19 = vsel %vm230_vm0, %v1039_v16, 0.0  ;;  %v1050_v23 = vsel %vm230_vm0, %v1041_v20, 0.0  ;;  %v1042_v24 = vmul.f32 %v1034_v21, %v1034_v21 }
 0x2a8   :  { %v906_v29 = vpop.f32.mrf.mxu0  ;;  %v947_v6 = vpop.f32.mrf.mxu1 }
 0x2a9   :  { %v1048_v8 = vsel %vm230_vm0, %v1040_v13, 0.0  ;;  %v1052_v4 = vsel %vm230_vm0, %v1042_v24, 0.0  ;;  %v1071_v29 = vld [vmem:[#allocation2] sm:$0xff] }
 0x2aa   :  { %v1049_v22 = vadd.f32 %v1048_v8, %v1047_v19 }
 0x2ac   :  { %v1051_v25 = vadd.f32 %v1050_v23, %v1049_v22 }
 0x2ae   :  { %v1053_v10 = vadd.f32 %v1052_v4, %v1051_v25 }
 0x2e2   :  { %v983_v26 = vpop.f32.mrf.mxu0  ;;  %v1024_v27 = vpop.f32.mrf.mxu1 }
 0x2e3   :  { %v1035_v28 = vmul.f32 0.03125, %v983_v26  ;;  %v1037_v30 = vmul.f32 0.03125, %v1024_v27 }
 0x2e4   :  { %v985_v31 = vpop.f32.mrf.mxu0  ;;  %v1026_v32 = vpop.f32.mrf.mxu1 }
 0x2e5   :  { %v1043_v7 = vmul.f32 %v1035_v28, %v1035_v28  ;;  %v1036_v34 = vmul.f32 0.03125, %v985_v31  ;;  %v1038_v35 = vmul.f32 0.03125, %v1026_v32  ;;  %v1045_v18 = vmul.f32 %v1037_v30, %v1037_v30 }
 0x2e6   :  { %v987_v11 = vpop.f32.mrf.mxu0  ;;  %v1028_v14 = vpop.f32.mrf.mxu1 }
 0x2e7   :  { %v1054_v15 = vsel %vm230_vm0, %v1043_v7, 0.0  ;;  %v1044_v36 = vmul.f32 %v1036_v34, %v1036_v34  ;;  %v1046_v41 = vmul.f32 %v1038_v35, %v1038_v35  ;;  %v1058_v43 = vsel %vm230_vm0, %v1045_v18, 0.0 }
 0x2e8   :  { %v1055_v37 = vadd.f32 %v1054_v15, %v1053_v10  ;;  %v988_v38 = vpop.f32.mrf.mxu0  ;;  %v1029_v39 = vpop.f32.mrf.mxu1 }
 0x2e9   :  { %v1056_v40 = vsel %vm230_vm0, %v1044_v36, 0.0  ;;  %v1060_v45 = vsel %vm230_vm0, %v1046_v41, 0.0 }
 0x2ea   :  { %v1057_v42 = vadd.f32 %v1056_v40, %v1055_v37 }
 0x2ec   :  { %v1059_v44 = vadd.f32 %v1058_v43, %v1057_v42 }
 0x2ee   :  { %v1061_v46 = vadd.f32 %v1060_v45, %v1059_v44 }
 0x2f0   :  { %1062 = vadd.xlane.f32.xlu0 %v1061_v46 }
 0x379   :  { %v1063_v47 = vpop.xlane.xlu0 %1062 }
 0x37a   :  { %1447 = vrsqrt.f32 %v1063_v47  ;;  %vm1066_vm3 = vcmp.eq.f32.partialorder %v1063_v47, inf  ;;  %v1069_v50 = vand.u32 2147483648, %v1063_v47  ;;  %vm1068_vm4 = vcmp.eq.f32.partialorder %v1063_v47, 0.0 }
 0x387   :  { %v1448_v48 = vpop.eup %1447 }
 0x388   :  { %v1065_v49 = vmul.f32 %v1448_v48, %v1063_v47 }
 0x38a   :  { %v1067_v51 = vsel %vm1066_vm3, %v1063_v47, %v1065_v49 }
 0x38b   :  { %v1070_v52 = vsel %vm1068_vm4, %v1069_v50, %v1067_v51 }
 0x38c   :  { %v1073_v53 = vadd.f32 1e-08, %v1070_v52 }
 0x38e   :  { %1449 = vrcp.f32 %v1073_v53 }
 0x39b   :  { %v1450_v54 = vpop.eup %1449 }
 0x39c   :  { %v1075_v55 = vmul.f32 %v1450_v54, %v1031_v12  ;;  %v1076_v56 = vmul.f32 %v1450_v54, %v1032_v33  ;;  %v1077_v57 = vmul.f32 %v1450_v54, %v1033_v17  ;;  %v1078_v58 = vmul.f32 %v1450_v54, %v1034_v21  ;;  %v1072_v33 = vld [vmem:[#allocation2 + $0x8] sm:$0xff] }
 0x39d   :  { %v1079_v59 = vmul.f32 %v1450_v54, %v1035_v28  ;;  %v1080_v60 = vmul.f32 %v1450_v54, %v1036_v34  ;;  %v1081_v61 = vmul.f32 %v1450_v54, %v1037_v30  ;;  %v1082_v62 = vmul.f32 %v1450_v54, %v1038_v35 }
 0x39e   :  { %v1091_v63 = vcombine.low %v1075_v55, %v1076_v56  ;;  %v1092_v0 = vcombine.low %v1077_v57, %v1078_v58 }
 0x39f   :  { %v1108_v1 = vcombine.low %v1079_v59, %v1080_v60  ;;  %v1109_v2 = vcombine.low %v1081_v61, %v1082_v62 }
 0x3a0   :  { %v1099_v5 = vrot.slane %v1091_v63, %v1908_v3  ;;  %v1106_v9 = vrot.slane %v1092_v0, %v1908_v3 }
 0x3a1   :  { %v1116_v6 = vrot.slane %v1108_v1, %v1908_v3  ;;  %v1123_v12 = vrot.slane %v1109_v2, %v1908_v3 }
 0x3a2   :  { %v1107_v13 = vcombine.low %v1099_v5, %v1106_v9 }
 0x3a3   :  { %v1124_v16 = vcombine.low %v1116_v6, %v1123_v12 }
 0x3a4   :  { %v1127_v17 = vadd.f32 %v1107_v13, %v1071_v29 }
 0x3a5   :  { %v1128_v8 = vadd.f32 %v1124_v16, %v1072_v33 }
 0x3a6   :  { %1129 = vst [vmem:[#allocation8] sm:$0xff] %v1127_v17 }
 0x3a7   :  { %1130 = vst [vmem:[#allocation8 + $0x8] sm:$0xff] %v1128_v8 }
 0x3a8   :  { %1522 = shalt.err (!%p1519_p5)
}
 0x3a9   :  { %1140 = dma.vmem_to_hbm [thread:$0]  %s1138_s2, 256, %s1892_s3, [#allocation4]  }
 0x3aa   :  { %1535 = dma.done.wait [#allocation4], 256  }
 0x3ab   :  { %1536 = vsyncadd [#allocation4], 4294967040 }
 0x3ac   :  { %1144 = vsyncpa [#allocation3], 1 }
 0x3ad   :  { %1145 = vsyncpa [#allocation6], 1 }
 0x3ae   :  { %1146 = vsyncpa [#allocation4], 1 }

</bundles_post_ra>
